<compile_context>
chip_gen: v7x
topology: tpu7x:2x2x1
jax: 0.10.0
libtpu: 0.0.40
codegen_flags: <defaults>
</compile_context>

<pallas_src>
import functools
import math

import jax
import jax.numpy as jnp
from jax.experimental import pallas as pl
from jax.experimental.pallas import tpu as pltpu

_EPS_NORM = 1e-15     # norm clamp (geoopt clamp_min(1e-15))
_EPS_ATANH = 1e-7     # artanh input clamp (geoopt)
_EPS_DENOM = 1e-10    # weighted_midpoint denominator clamp_abs
_EPS_PROJ = 4e-3      # geoopt float32 ball-projection eps


def _round_up(x, m):
    return ((x + m - 1) // m) * m


def _cdiv(a, b):
    return (a + b - 1) // b


def _artanh(x):
    x = jnp.clip(x, -1.0 + _EPS_ATANH, 1.0 - _EPS_ATANH)
    return 0.5 * (jnp.log(1.0 + x) - jnp.log(1.0 - x))


def _artan_k(x, sk, inv_sk):
    # curvature k < 0 (hyperbolic branch)
    return _artanh(sk * x) * inv_sk


def _tan_k(x, sk, inv_sk):
    return jnp.tanh(sk * x) * inv_sk


# --------------------------------------------------------------------------------------
# Pass 1: per-node Mobius matvec + fused midpoint lanes -> B = [gamma*XW | gamma-1 | 1 | 0]
# Runs once over the n nodes (grid over row tiles only).
# --------------------------------------------------------------------------------------
def _mobius_b_kernel(x_ref, w_ref, b_ref, *, k, d_out):
    sk = math.sqrt(-k)
    inv_sk = 1.0 / sk
    maxnorm = (1.0 - _EPS_PROJ) * inv_sk

    x = x_ref[...]                                   # (tb, d_in) native dtype
    w = w_ref[...]                                   # (d_in, d_acc), zero-padded lanes >= d_out
    mx = jnp.dot(x, w, preferred_element_type=jnp.float32)        # (tb, d_acc) [MXU]

    xf = x.astype(jnp.float32)
    x_norm = jnp.maximum(jnp.sqrt(jnp.sum(xf * xf, axis=-1, keepdims=True)), _EPS_NORM)
    mx_nsq = jnp.sum(mx * mx, axis=-1, keepdims=True)
    mx_norm = jnp.maximum(jnp.sqrt(mx_nsq), _EPS_NORM)

    t = (mx_norm / x_norm) * _artan_k(x_norm, sk, inv_sk)
    scale = _tan_k(t, sk, inv_sk)                    # >= 0, equals ||W (x)_k X|| per row
    scale = jnp.minimum(scale, maxnorm)              # geoopt project, folded analytically
    scale = jnp.where(mx_nsq == 0.0, 0.0, scale)     # mobius_matvec zero-row condition
    xw = (scale / mx_norm) * mx                      # (tb, d_acc)

    # Conformal factor gamma_j = 2 / clamp_min(1 + k*||xw_j||^2, eps); ||xw_j|| == scale.
    gamma = 2.0 / jnp.maximum(1.0 + k * (scale * scale), _EPS_NORM)

    lane = jax.lax.broadcasted_iota(jnp.int32, mx.shape, 1)
    b = gamma * xw
    b = jnp.where(lane == d_out, gamma - 1.0, b)     # denominator lane
    b = jnp.where(lane == d_out + 1, 1.0, b)         # alpha (row-sum) lane
    b_ref[...] = b.astype(b_ref.dtype)               # bf16 by default


# --------------------------------------------------------------------------------------
# Pass 2: tiled A @ B with f32 accumulation + weighted-midpoint / sigma epilogue.
# --------------------------------------------------------------------------------------
def _aggregate_kernel(a_ref, b_ref, o_ref, acc_ref, *, k, d_out, n, tile_k, mask_k):
    sk = math.sqrt(-k)
    inv_sk = 1.0 / sk
    maxnorm = (1.0 - _EPS_PROJ) * inv_sk

    kk = pl.program_id(1)

    @pl.when(kk == 0)
    def _init():
        acc_ref[...] = jnp.zeros_like(acc_ref)

    a = a_ref[...]                                   # (tm, tk) matmul dtype (bf16 default)
    if mask_k:
        # A is NOT padded in HBM; zero the out-of-range tail columns read from the
        # partial boundary block (only compiled in when n % tile_k != 0).
        col = kk * tile_k + jax.lax.broadcasted_iota(jnp.int32, a.shape, 1)
        a = jnp.where(col < n, a, jnp.zeros_like(a))

    acc_ref[...] += jnp.dot(a, b_ref[...], preferred_element_type=jnp.float32)

    @pl.when(kk == pl.num_programs(1) - 1)
    def _finalize():
        acc = acc_ref[...]                           # (tm, d_acc) f32
        olane = jax.lax.broadcasted_iota(jnp.int32, acc.shape, 1)
        denom = acc[:, d_out:d_out + 1]              # sum_j A_ij (gamma_j - 1)
        alpha = acc[:, d_out + 1:d_out + 2]          # sum_j A_ij   (lincomb weight)
        nom = jnp.where(olane < d_out, acc, 0.0)     # sum_j A_ij gamma_j XW_j (pad lanes -> 0)

        # clamp_abs(denom, 1e-10).  NOTE: sign(0) -> +1 here; geoopt's sign(0)=0 keeps a
        # zero denominator (NaN) — only differs when a row of A@(gamma-1) is exactly 0.
        sgn = jnp.where(denom >= 0.0, 1.0, -1.0)
        denom_c = sgn * jnp.maximum(jnp.abs(denom), _EPS_DENOM)
        two_mean = nom / denom_c                     # exact divide (correctness review)

        tm_norm = jnp.maximum(
            jnp.sqrt(jnp.sum(two_mean * two_mean, axis=-1, keepdims=True)), _EPS_NORM)
        unit = two_mean / tm_norm

        # a_mean = mobius_scalar_mul(0.5, two_mean); ||a_mean|| == t_half, so the lincomb
        # scalar-mul and the midpoint projection reduce to scalars on the unit direction.
        t_half = _tan_k(0.5 * _artan_k(tm_norm, sk, inv_sk), sk, inv_sk)
        t_lin = _tan_k(alpha * _artan_k(jnp.maximum(t_half, _EPS_NORM), sk, inv_sk),
                       sk, inv_sk)
        t_lin = jnp.clip(t_lin, -maxnorm, maxnorm)   # weighted_midpoint project=True

        # sigma = expmap0(relu(logmap0(.)));  ||axw|| == |t_lin| and artan_k is odd.
        u = _artan_k(t_lin, sk, inv_sk) * unit       # logmap0(axw)
        u = jnp.maximum(u, 0.0)                      # relu
        n_u = jnp.maximum(jnp.sqrt(jnp.sum(u * u, axis=-1, keepdims=True)), _EPS_NORM)
        out_scale = jnp.minimum(_tan_k(n_u, sk, inv_sk), maxnorm)   # expmap0 + project
        o_ref[...] = ((out_scale / n_u) * u).astype(o_ref.dtype)


def kappa_gcn_layer(X, W, A_hat, curvature=-1.0, matmul_dtype=jnp.bfloat16):
    """Pallas implementation of KappaGCNLayer.forward(X, A_hat) for a kappa-stereographic
    manifold with negative curvature `curvature` and relu nonlinearity.

    `matmul_dtype` controls the dtype of the dominant A @ B stream (bf16 default, f32
    accumulation); pass jnp.float32 to keep the full-precision stream.
    """
    assert curvature < 0.0, "this kernel implements the hyperbolic (kappa < 0) branch"
    n, d_in = X.shape
    d_out = W.shape[1]

    # Fused/lane-dense width: gamma*xw lanes + [gamma-1, alpha] lanes, padded to 128.
    # (A separately precomputed alpha only wins when d_out % 128 in {0, 127}; here the
    #  two extra lanes live in the same padded 128-lane block, so keep them fused.)
    d_acc = _round_up(d_out + 2, 128)

    # Reduction (A columns / B rows) tile: as large as comfortably fits VMEM.
    tile_k = min(1024, _round_up(n, 128))
    # Row tile (parallel axis): keep >= 2 blocks when n > 128 so v7x megacore has work.
    tile_m = min(1024, _round_up(n, 128))
    if n > 128:
        tile_m = min(tile_m, max(128, _round_up(_cdiv(n, 2), 128)))
    gi = _cdiv(n, tile_m)
    gk = _cdiv(n, tile_k)
    mask_k = (n % tile_k) != 0

    # Pad only the small per-node arrays (X rows, W lanes); A_hat is streamed unpadded.
    n_rows_pad = gk * tile_k
    X_p = jnp.pad(X, ((0, n_rows_pad - n), (0, 0)))
    W_p = jnp.pad(W, ((0, 0), (0, d_acc - d_out))).astype(X.dtype)

    # ---- Pass 1: build B once (n rows), emitted directly in the matmul dtype ---------
    p1_vmem = (2 * tile_k * d_in * X.dtype.itemsize
               + 2 * d_in * d_acc * X.dtype.itemsize
               + 2 * tile_k * d_acc * jnp.dtype(matmul_dtype).itemsize)
    p1_limit = int(2 * p1_vmem) if p1_vmem > (12 << 20) else None
    b_mat = pl.pallas_call(
        functools.partial(_mobius_b_kernel, k=float(curvature), d_out=int(d_out)),
        out_shape=jax.ShapeDtypeStruct((n_rows_pad, d_acc), matmul_dtype),
        grid=(gk,),
        in_specs=[
            pl.BlockSpec((tile_k, d_in), lambda i: (i, 0)),
            pl.BlockSpec((d_in, d_acc), lambda i: (0, 0)),
        ],
        out_specs=pl.BlockSpec((tile_k, d_acc), lambda i: (i, 0)),
        compiler_params=pltpu.CompilerParams(
            dimension_semantics=("parallel",),
            vmem_limit_bytes=p1_limit,
        ),
    )(X_p, W_p)

    # bf16 stream for the dominant A @ B matmul (in a multi-layer KappaGCN the bf16
    # A_hat is reused across layers, so this cast amortizes to ~free).
    A_m = A_hat.astype(matmul_dtype)

    # ---- Pass 2: tiled A @ B + epilogue ----------------------------------------------
    kernel = functools.partial(
        _aggregate_kernel, k=float(curvature), d_out=int(d_out),
        n=int(n), tile_k=int(tile_k), mask_k=bool(mask_k))

    a_bytes = jnp.dtype(matmul_dtype).itemsize
    cost = pl.CostEstimate(
        flops=int(2 * n * n_rows_pad * d_acc),
        transcendentals=int(10 * n),
        bytes_accessed=int(a_bytes * n * n
                           + a_bytes * gi * n_rows_pad * d_acc
                           + X.dtype.itemsize * n * d_acc),
    )

    out = pl.pallas_call(
        kernel,
        out_shape=jax.ShapeDtypeStruct((n, d_acc), X.dtype),
        grid=(gi, gk),
        in_specs=[
            pl.BlockSpec((tile_m, tile_k), lambda i, kk: (i, kk)),   # A_hat tile (streamed)
            pl.BlockSpec((tile_k, d_acc), lambda i, kk: (kk, 0)),    # fused B tile
        ],
        out_specs=pl.BlockSpec((tile_m, d_acc), lambda i, kk: (i, 0)),
        scratch_shapes=[pltpu.VMEM((tile_m, d_acc), jnp.float32)],
        compiler_params=pltpu.CompilerParams(
            dimension_semantics=("parallel", "arbitrary"),
        ),
        cost_estimate=cost,
    )(A_m, b_mat)

    return out[:, :d_out]


if __name__ == "__main__":
    key = jax.random.PRNGKey(0)
    n_nodes, in_features, out_features = 16, 8, 32
    k_w, k_x, k_a = jax.random.split(key, 3)

    # Deterministic parameter init, matching torch.randn(in, out) * 0.01
    W = 0.01 * jax.random.normal(k_w, (in_features, out_features), dtype=jnp.float32)

    # Node embeddings: points inside the unit (Poincare) ball.
    X = 0.1 * jax.random.normal(k_x, (n_nodes, in_features), dtype=jnp.float32)
    xn = jnp.linalg.norm(X, axis=-1, keepdims=True)
    X = jnp.where(xn > 0.9, X * (0.9 / xn), X)

    # Normalized adjacency A_hat = D^{-1/2} (A + I) D^{-1/2}
    A = (jax.random.uniform(k_a, (n_nodes, n_nodes)) < 0.3).astype(jnp.float32)
    A = jnp.minimum(jnp.maximum(A, A.T) + jnp.eye(n_nodes, dtype=jnp.float32), 1.0)
    deg_isqrt = 1.0 / jnp.sqrt(jnp.sum(A, axis=-1))
    A_hat = A * deg_isqrt[:, None] * deg_isqrt[None, :]

    out = kappa_gcn_layer(X, W, A_hat, curvature=-1.0)
    out = jax.block_until_ready(out)
    assert out.shape == (n_nodes, out_features)
    assert bool(jnp.all(jnp.isfinite(out)))
    print("KERNEL_OK")
</pallas_src>

<mosaic_0001>
module attributes {stable_mosaic.version = 11 : i64} {
  func.func @_mobius_b_kernel(%arg0: i32, %arg1: memref<128x8xf32, #tpu.memory_space<vmem>>, %arg2: memref<8x128xf32, #tpu.memory_space<vmem>>, %arg3: memref<128x128xbf16, #tpu.memory_space<vmem>>) attributes {dimension_semantics = [#tpu.dimension_semantics<parallel>], iteration_bounds = array<i64: 1>, scalar_prefetch = 0 : i64, scratch_operands = 0 : i64, tpu.core_type = #tpu.core_type<tc>, window_params = [{transform_indices = @transform_0, window_bounds = array<i64: 128, 8>}, {pipeline_mode = #tpu.pipeline_mode<synchronous>, transform_indices = @transform_1, window_bounds = array<i64: 8, 128>}, {transform_indices = @transform_2, window_bounds = array<i64: 128, 128>}]} {
    %c0 = arith.constant 0 : index
    %c0_0 = arith.constant 0 : index
    %0 = vector.load %arg1[%c0, %c0_0] : memref<128x8xf32, #tpu.memory_space<vmem>>, vector<128x8xf32>
    %c0_1 = arith.constant 0 : index
    %c0_2 = arith.constant 0 : index
    %1 = vector.load %arg2[%c0_1, %c0_2] : memref<8x128xf32, #tpu.memory_space<vmem>>, vector<8x128xf32>
    %cst = arith.constant dense<0.000000e+00> : vector<128x128xf32>
    %2 = tpu.matmul %0, %1, %cst {dimension_numbers = #tpu.dot_dimension_numbers<[1], [0], [0], [1], [0, 0, 1, 1], [], []>} : vector<128x8xf32>, vector<8x128xf32>, vector<128x128xf32> -> vector<128x128xf32>
    %3 = arith.mulf %0, %0 : vector<128x8xf32>
    %cst_3 = arith.constant dense<0.000000e+00> : vector<128xf32>
    %4 = vector.multi_reduction <add>, %3, %cst_3 [1] : vector<128x8xf32> to vector<128xf32>
    %5 = vector.shape_cast %4 : vector<128xf32> to vector<128x1xf32>
    %6 = math.sqrt %5 : vector<128x1xf32>
    %cst_4 = arith.constant 1.000000e-15 : f32
    %7 = vector.broadcast %cst_4 : f32 to vector<128x1xf32>
    %8 = arith.maximumf %6, %7 : vector<128x1xf32>
    %9 = arith.mulf %2, %2 : vector<128x128xf32>
    %cst_5 = arith.constant dense<0.000000e+00> : vector<128xf32>
    %10 = vector.multi_reduction <add>, %9, %cst_5 [1] : vector<128x128xf32> to vector<128xf32>
    %11 = vector.shape_cast %10 : vector<128xf32> to vector<128x1xf32>
    %12 = math.sqrt %11 : vector<128x1xf32>
    %cst_6 = arith.constant 1.000000e-15 : f32
    %13 = vector.broadcast %cst_6 : f32 to vector<128x1xf32>
    %14 = arith.maximumf %12, %13 : vector<128x1xf32>
    %15 = arith.divf %14, %8 : vector<128x1xf32>
    %cst_7 = arith.constant 1.000000e+00 : f32
    %16 = vector.broadcast %cst_7 : f32 to vector<128x1xf32>
    %17 = arith.mulf %16, %8 : vector<128x1xf32>
    %cst_8 = arith.constant -0.99999988 : f32
    %cst_9 = arith.constant 0.99999988 : f32
    %18 = vector.broadcast %cst_8 : f32 to vector<128x1xf32>
    %19 = arith.maximumf %18, %17 : vector<128x1xf32>
    %20 = vector.broadcast %cst_9 : f32 to vector<128x1xf32>
    %21 = arith.minimumf %20, %19 : vector<128x1xf32>
    %cst_10 = arith.constant 1.000000e+00 : f32
    %22 = vector.broadcast %cst_10 : f32 to vector<128x1xf32>
    %23 = arith.addf %22, %21 : vector<128x1xf32>
    %24 = math.log %23 : vector<128x1xf32>
    %cst_11 = arith.constant 1.000000e+00 : f32
    %25 = vector.broadcast %cst_11 : f32 to vector<128x1xf32>
    %26 = arith.subf %25, %21 : vector<128x1xf32>
    %27 = math.log %26 : vector<128x1xf32>
    %28 = arith.subf %24, %27 : vector<128x1xf32>
    %cst_12 = arith.constant 5.000000e-01 : f32
    %29 = vector.broadcast %cst_12 : f32 to vector<128x1xf32>
    %30 = arith.mulf %29, %28 : vector<128x1xf32>
    %cst_13 = arith.constant 1.000000e+00 : f32
    %31 = vector.broadcast %cst_13 : f32 to vector<128x1xf32>
    %32 = arith.mulf %30, %31 : vector<128x1xf32>
    %33 = arith.mulf %15, %32 : vector<128x1xf32>
    %cst_14 = arith.constant 1.000000e+00 : f32
    %34 = vector.broadcast %cst_14 : f32 to vector<128x1xf32>
    %35 = arith.mulf %34, %33 : vector<128x1xf32>
    %36 = math.tanh %35 : vector<128x1xf32>
    %cst_15 = arith.constant 1.000000e+00 : f32
    %37 = vector.broadcast %cst_15 : f32 to vector<128x1xf32>
    %38 = arith.mulf %36, %37 : vector<128x1xf32>
    %cst_16 = arith.constant 0.995999991 : f32
    %39 = vector.broadcast %cst_16 : f32 to vector<128x1xf32>
    %40 = arith.minimumf %38, %39 : vector<128x1xf32>
    %cst_17 = arith.constant 0.000000e+00 : f32
    %41 = vector.broadcast %cst_17 : f32 to vector<128x1xf32>
    %42 = arith.cmpf oeq, %11, %41 : vector<128x1xf32>
    %cst_18 = arith.constant 0.000000e+00 : f32
    %43 = vector.broadcast %cst_18 : f32 to vector<128x1xf32>
    %44 = arith.select %42, %43, %40 : vector<128x1xi1>, vector<128x1xf32>
    %45 = arith.divf %44, %14 : vector<128x1xf32>
    %46 = vector.broadcast %45 : vector<128x1xf32> to vector<128x128xf32>
    %47 = arith.mulf %46, %2 : vector<128x128xf32>
    %48 = arith.mulf %44, %44 : vector<128x1xf32>
    %cst_19 = arith.constant -1.000000e+00 : f32
    %49 = vector.broadcast %cst_19 : f32 to vector<128x1xf32>
    %50 = arith.mulf %49, %48 : vector<128x1xf32>
    %cst_20 = arith.constant 1.000000e+00 : f32
    %51 = vector.broadcast %cst_20 : f32 to vector<128x1xf32>
    %52 = arith.addf %51, %50 : vector<128x1xf32>
    %cst_21 = arith.constant 1.000000e-15 : f32
    %53 = vector.broadcast %cst_21 : f32 to vector<128x1xf32>
    %54 = arith.maximumf %52, %53 : vector<128x1xf32>
    %cst_22 = arith.constant 2.000000e+00 : f32
    %55 = vector.broadcast %cst_22 : f32 to vector<128x1xf32>
    %56 = arith.divf %55, %54 : vector<128x1xf32>
    %57 = tpu.iota {dimensions = array<i32: 1>} : vector<128x128xi32>
    %58 = vector.broadcast %56 : vector<128x1xf32> to vector<128x128xf32>
    %59 = arith.mulf %58, %47 : vector<128x128xf32>
    %c32_i32 = arith.constant 32 : i32
    %60 = vector.broadcast %c32_i32 : i32 to vector<128x128xi32>
    %61 = arith.cmpi eq, %57, %60 : vector<128x128xi32>
    %cst_23 = arith.constant 1.000000e+00 : f32
    %62 = vector.broadcast %cst_23 : f32 to vector<128x1xf32>
    %63 = arith.subf %56, %62 : vector<128x1xf32>
    %64 = vector.shape_cast %63 : vector<128x1xf32> to vector<128x1xf32>
    %65 = vector.broadcast %64 : vector<128x1xf32> to vector<128x128xf32>
    %66 = arith.select %61, %65, %59 : vector<128x128xi1>, vector<128x128xf32>
    %c33_i32 = arith.constant 33 : i32
    %67 = vector.broadcast %c33_i32 : i32 to vector<128x128xi32>
    %68 = arith.cmpi eq, %57, %67 : vector<128x128xi32>
    %cst_24 = arith.constant 1.000000e+00 : f32
    %69 = vector.broadcast %cst_24 : f32 to vector<128x128xf32>
    %70 = arith.select %68, %69, %66 : vector<128x128xi1>, vector<128x128xf32>
    %71 = arith.truncf %70 : vector<128x128xf32> to vector<128x128xbf16>
    %c0_25 = arith.constant 0 : index
    %c0_26 = arith.constant 0 : index
    %72 = vector.load %arg3[%c0_25, %c0_26] : memref<128x128xbf16, #tpu.memory_space<vmem>>, vector<128x128xbf16>
    tpu.vector_store %arg3[%c0_25, %c0_26], %71 {strides = array<i32>} : memref<128x128xbf16, #tpu.memory_space<vmem>>, vector<128x128xbf16>,
    return
  }
  func.func @transform_0(%arg0: i32) -> (i32, i32) {
    %c0_i32 = arith.constant 0 : i32
    %c0_i32_0 = arith.constant 0 : i32
    return %arg0, %c0_i32 : i32, i32
  }
  func.func @transform_1(%arg0: i32) -> (i32, i32) {
    %c0_i32 = arith.constant 0 : i32
    %c0_i32_0 = arith.constant 0 : i32
    %c0_i32_1 = arith.constant 0 : i32
    return %c0_i32, %c0_i32_0 : i32, i32
  }
  func.func @transform_2(%arg0: i32) -> (i32, i32) {
    %c0_i32 = arith.constant 0 : i32
    %c0_i32_0 = arith.constant 0 : i32
    return %arg0, %c0_i32 : i32, i32
  }
}

</mosaic_0001>

<bundles_post_ra>
// kernel: tpu_custom_call.1
= control target key start
LH: loop header
LB: loop body
LE: loop exit
PB: predicated region body
PF: predicated region fallthrough
CT: control target
= control target key end

     0   :  { %vm29_vm0 = vcmask 64512   ;;  %s2558_s0 = inlined_call_operand.vmem [shape: f32[128,8], index: 0, kind: input, shape index: {}]   ;;  %s2559_s1 = inlined_call_operand.vmem [shape: f32[8,128], index: 1, kind: input, shape index: {}]   ;;  %s2560_s2 = inlined_call_operand.hbm [shape: bf16[128,128], index: 2, kind: output, shape index: {}]  }
   0x1   :  { %v28_v0 = vld [vmem:[%s2559_s1] sm:$0xff]  ;;  %v13_v2 = vld [vmem:[%s2558_s0 + $0x8] sm:$0xff]  ;;  %v14_v5 = vld [vmem:[%s2558_s0 + $0x10] sm:$0xff] }
   0x2   :  { %v12_v1 = vld [vmem:[%s2558_s0] sm:$0xff]  ;;  %1315 = vmatprep.subr.mxu0 %v28_v0  ;;  %1341 = vmatprep.subr.mxu1 %v28_v0  ;;  %v21_v6 = vld [vmem:[%s2558_s0 + $0x48] sm:$0xff]  ;;  %v15_v7 = vld [vmem:[%s2558_s0 + $0x18] sm:$0xff]  ;;  %v225_v8 = vmul.f32 %v14_v5, %v14_v5  ;;  %v224_v12 = vmul.f32 %v13_v2, %v13_v2 }
   0x3   :  { %1317 = vmatprep.mubr.msk.f32.mxu0 %vm29_vm0, %v12_v1  ;;  %v223_v3 = vmul.f32 %v12_v1, %v12_v1  ;;  %v20_v4 = vld [vmem:[%s2558_s0 + $0x40] sm:$0xff]  ;;  %1316 = vmatpush3.msra.mxu0 %v28_v0  ;;  %v22_v9 = vld [vmem:[%s2558_s0 + $0x50] sm:$0xff]  ;;  %v226_v11 = vmul.f32 %v15_v7, %v15_v7  ;;  %v17_v15 = vld [vmem:[%s2558_s0 + $0x28] sm:$0xff] }
   0x4   :  { %1318 = vmatmul.mubr.msk.f32.vlgmr.msra.gmra.mrb[0].mxu0 %vm29_vm0, %v13_v2  ;;  %1342 = vmatpush3.msra.mxu1 %v28_v0  ;;  %v245_v13 = vsel %vm29_vm0, %v225_v8, 0.0  ;;  %v16_v14 = vld [vmem:[%s2558_s0 + $0x20] sm:$0xff] }
   0x5   :  { %v239_v10 = vsel %vm29_vm0, %v223_v3, 0.0  ;;  %1329 = vmatprep.mubr.msk.f32.mxu1 %vm29_vm0, %v20_v4  ;;  %1320 = vmatprep.mubr.msk.f32.mxu0 %vm29_vm0, %v14_v5 }
   0x6   :  { %1330 = vmatmul.mubr.msk.f32.vlgmr.msra.gmra.mrb[0].mxu1 %vm29_vm0, %v21_v6  ;;  %246 = vadd.xlane.f32.xlu1 %v245_v13 }
   0x7   :  { %7 = vsyncpa [#allocation3], 0  ;;  %1332 = vmatprep.mubr.msk.f32.mxu1 %vm29_vm0, %v22_v9  ;;  %v23_v16 = vld [vmem:[%s2558_s0 + $0x58] sm:$0xff]  ;;  %240 = vadd.xlane.f32.xlu0 %v239_v10  ;;  %v248_v17 = vsel %vm29_vm0, %v226_v11, 0.0  ;;  %v228_v18 = vmul.f32 %v17_v15, %v17_v15  ;;  %v24_v19 = vld [vmem:[%s2558_s0 + $0x60] sm:$0xff]  ;;  %v242_v20 = vsel %vm29_vm0, %v224_v12, 0.0  ;;  %v227_v21 = vmul.f32 %v16_v14, %v16_v14 }
   0x8   :  { %1321 = vmatmul.mubr.msk.f32.gmra.mrb[2].mxu0 %vm29_vm0, %v15_v7  ;;  %v18_v22 = vld [vmem:[%s2558_s0 + $0x30] sm:$0xff]  ;;  %v19_v23 = vld [vmem:[%s2558_s0 + $0x38] sm:$0xff]  ;;  %v25_v24 = vld [vmem:[%s2558_s0 + $0x68] sm:$0xff]  ;;  %v232_v32 = vmul.f32 %v21_v6, %v21_v6  ;;  %v231_v33 = vmul.f32 %v20_v4, %v20_v4  ;;  %v234_v36 = vmul.f32 %v23_v16, %v23_v16  ;;  %v233_v38 = vmul.f32 %v22_v9, %v22_v9 }
   0x9   :  { %1323 = vmatprep.mubr.msk.f32.mxu0 %vm29_vm0, %v16_v14  ;;  %v254_v25 = vsel %vm29_vm0, %v228_v18, 0.0  ;;  %v230_v26 = vmul.f32 %v19_v23, %v19_v23  ;;  %v26_v27 = vld [vmem:[%s2558_s0 + $0x70] sm:$0xff]  ;;  %v251_v28 = vsel %vm29_vm0, %v227_v21, 0.0  ;;  %v229_v29 = vmul.f32 %v18_v22, %v18_v22  ;;  %v27_v30 = vld [vmem:[%s2558_s0 + $0x78] sm:$0xff]  ;;  %s1626_s0 = smov [#allocation2]  }
   0xa   :  { %1333 = vmatmul.mubr.msk.f32.gmra.mrb[2].mxu1 %vm29_vm0, %v23_v16  ;;  %249 = vadd.xlane.f32.xlu1 %v248_v17  ;;  %v266_v35 = vsel %vm29_vm0, %v232_v32, 0.0  ;;  %v263_v37 = vsel %vm29_vm0, %v231_v33, 0.0  ;;  %v272_v39 = vsel %vm29_vm0, %v234_v36, 0.0  ;;  %v236_v40 = vmul.f32 %v25_v24, %v25_v24  ;;  %s1160_s14 = sshll.u32 %s1626_s0, 4  ;;  %s1161_s14 = int_to_ptr.vmem [resolvable:$true] %s1160_s14 }
   0xb   :  { %1335 = vmatprep.mubr.msk.f32.mxu1 %vm29_vm0, %v24_v19  ;;  %243 = vadd.xlane.f32.xlu0 %v242_v20  ;;  %v260_v31 = vsel %vm29_vm0, %v230_v26, 0.0  ;;  %v257_v34 = vsel %vm29_vm0, %v229_v29, 0.0  ;;  %v269_v41 = vsel %vm29_vm0, %v233_v38, 0.0  ;;  %v235_v42 = vmul.f32 %v24_v19, %v24_v19  ;;  %s1602_s15 = scalar_lea.vmem %s1161_s14, 1024  ;;  %p1607_p1 = scmp.lt.s32.totalorder %s1161_s14, %s1161_s14 }
   0xc   :  { %1324 = vmatmul.mubr.msk.f32.gmra.mrb[4].mxu0 %vm29_vm0, %v17_v15  ;;  %v278_v43 = vsel %vm29_vm0, %v236_v40, 0.0  ;;  %v238_v44 = vmul.f32 %v27_v30, %v27_v30  ;;  %v237_v46 = vmul.f32 %v26_v27, %v26_v27  ;;  %p1603_p0 = scmp.ne.s32.totalorder %s1161_s14, %s1602_s15  ;;  %p1608_p2 = scmp.lt.s32.totalorder %s1602_s15, %s1602_s15 }
   0xd   :  { %1326 = vmatprep.mubr.msk.f32.mxu0 %vm29_vm0, %v18_v22  ;;  %v275_v45 = vsel %vm29_vm0, %v235_v42, 0.0 }
   0xe   :  { %1336 = vmatmul.mubr.msk.f32.gmra.mrb[4].mxu1 %vm29_vm0, %v25_v24  ;;  %255 = vadd.xlane.f32.xlu1 %v254_v25  ;;  %v284_v47 = vsel %vm29_vm0, %v238_v44, 0.0  ;;  %v281_v48 = vsel %vm29_vm0, %v237_v46, 0.0  ;;  %p1609_p3 = por %p1608_p2, %p1607_p1 }
   0xf   :  { %1338 = vmatprep.mubr.msk.f32.mxu1 %vm29_vm0, %v26_v27  ;;  %252 = vadd.xlane.f32.xlu0 %v251_v28 }
  0x10   :  { %1327 = vmatmul.mubr.msk.f32.gmra.mrb[6].mxu0 %vm29_vm0, %v19_v23  ;;  %p1610_p4 = pnand %p1609_p3, %p1603_p0 }
  0x12   :  { %1339 = vmatmul.mubr.msk.f32.gmra.mrb[6].mxu1 %vm29_vm0, %v27_v30  ;;  %261 = vadd.xlane.f32.xlu1 %v260_v31 }
  0x13   :  { %258 = vadd.xlane.f32.xlu0 %v257_v34 }
  0x16   :  { %267 = vadd.xlane.f32.xlu1 %v266_v35 }
  0x17   :  { %264 = vadd.xlane.f32.xlu0 %v263_v37 }
  0x1a   :  { %273 = vadd.xlane.f32.xlu1 %v272_v39 }
  0x1b   :  { %270 = vadd.xlane.f32.xlu0 %v269_v41 }
  0x1e   :  { %279 = vadd.xlane.f32.xlu1 %v278_v43 }
  0x1f   :  { %276 = vadd.xlane.f32.xlu0 %v275_v45 }
  0x22   :  { %285 = vadd.xlane.f32.xlu1 %v284_v47 }
  0x23   :  { %282 = vadd.xlane.f32.xlu0 %v281_v48 }
  0x93   :  { %v247_v17 = vpop.xlane.xlu1 %246 }
  0x94   :  { %1346 = vrsqrt.f32 %v247_v17  ;;  %v241_v18 = vpop.xlane.xlu0 %240  ;;  %vm303_vm1 = vcmp.eq.f32.partialorder %v247_v17, inf  ;;  %v306_v27 = vand.u32 2147483648, %v247_v17  ;;  %vm305_vm2 = vcmp.eq.f32.partialorder %v247_v17, 0.0 }
  0x95   :  { %1348 = vrsqrt.f32 %v241_v18  ;;  %vm289_vm3 = vcmp.eq.f32.partialorder %v241_v18, inf  ;;  %v292_v34 = vand.u32 2147483648, %v241_v18  ;;  %vm291_vm5 = vcmp.eq.f32.partialorder %v241_v18, 0.0 }
  0x97   :  { %v250_v19 = vpop.xlane.xlu1 %249 }
  0x98   :  { %1350 = vrsqrt.f32 %v250_v19  ;;  %v244_v20 = vpop.xlane.xlu0 %243  ;;  %vm310_vm4 = vcmp.eq.f32.partialorder %v250_v19, inf  ;;  %v313_v37 = vand.u32 2147483648, %v250_v19  ;;  %vm312_vm6 = vcmp.eq.f32.partialorder %v250_v19, 0.0 }
  0x99   :  { %1352 = vrsqrt.f32 %v244_v20  ;;  %vm296_vm7 = vcmp.eq.f32.partialorder %v244_v20, inf  ;;  %v299_v45 = vand.u32 2147483648, %v244_v20  ;;  %vm298_vm8 = vcmp.eq.f32.partialorder %v244_v20, 0.0 }
  0x9b   :  { %v1791_v22 = vpop.xlane.xlu1 %255 }
  0x9c   :  { %1354 = vrsqrt.f32 %v1791_v22  ;;  %v1794_v25 = vpop.xlane.xlu0 %252  ;;  %vm324_vm9 = vcmp.eq.f32.partialorder %v1791_v22, inf  ;;  %vm326_vm10 = vcmp.eq.f32.partialorder %v1791_v22, 0.0 }
  0x9d   :  { %1356 = vrsqrt.f32 %v1794_v25  ;;  %vm317_vm11 = vcmp.eq.f32.partialorder %v1794_v25, inf  ;;  %vm319_vm12 = vcmp.eq.f32.partialorder %v1794_v25, 0.0 }
  0x9e   :  { %v1347_v21 = vpop.eup %1346 }
  0x9f   :  { %v302_v23 = vmul.f32 %v1347_v21, %v247_v17  ;;  %v1349_v24 = vpop.eup %1348  ;;  %v1796_v30 = vpop.xlane.xlu1 %261 }
  0xa0   :  { %v288_v29 = vmul.f32 %v1349_v24, %v241_v18  ;;  %v1799_v36 = vpop.xlane.xlu0 %258  ;;  %1358 = vrsqrt.f32 %v1796_v30  ;;  %vm338_vm13 = vcmp.eq.f32.partialorder %v1796_v30, inf  ;;  %vm340_vm14 = vcmp.eq.f32.partialorder %v1796_v30, 0.0 }
  0xa1   :  { %v304_v28 = vsel %vm303_vm1, %v247_v17, %v302_v23  ;;  %1360 = vrsqrt.f32 %v1799_v36  ;;  %v320_v17 = vand.u32 2147483648, %v1794_v25  ;;  %vm331_vm15 = vcmp.eq.f32.partialorder %v1799_v36, inf }
  0xa2   :  { %v1351_v26 = vpop.eup %1350  ;;  %v307_v33 = vsel %vm305_vm2, %v306_v27, %v304_v28  ;;  %v290_v35 = vsel %vm289_vm3, %v241_v18, %v288_v29  ;;  %vm333_vm0 = vcmp.eq.f32.partialorder %v1799_v36, 0.0 }
  0xa3   :  { %v309_v31 = vmul.f32 %v1351_v26, %v250_v19  ;;  %v1353_v32 = vpop.eup %1352  ;;  %v401_v38 = vmax.f32 %v307_v33, 1e-15  ;;  %v1801_v41 = vpop.xlane.xlu1 %267  ;;  %v293_v42 = vsel %vm291_vm5, %v292_v34, %v290_v35 }
  0xa4   :  { %v295_v40 = vmul.f32 %v1353_v32, %v244_v20  ;;  %v399_v47 = vmax.f32 %v293_v42, 1e-15  ;;  %1362 = vrsqrt.f32 %v1801_v41  ;;  %v341_v32 = vand.u32 2147483648, %v1796_v30 }
  0xa5   :  { %v311_v39 = vsel %vm310_vm4, %v250_v19, %v309_v31  ;;  %v1189_v46 = vclamps-f32 %v401_v38, 0.9999999  ;;  %1364 = vrcp.f32 %v401_v38  ;;  %vm352_vm1 = vcmp.eq.f32.partialorder %v1801_v41, inf }
  0xa6   :  { %v1355_v43 = vpop.eup %1354  ;;  %v314_v44 = vsel %vm312_vm6, %v313_v37, %v311_v39  ;;  %v297_v48 = vsel %vm296_vm7, %v244_v20, %v295_v40  ;;  %vm354_vm2 = vcmp.eq.f32.partialorder %v1801_v41, 0.0 }
  0xd7   :  { %v1727_v49 = vpop.f32.mrb[0].mxu0 }
  0xd8   :  { %v1729_v50 = vpop.f32.mrb[1].mxu0  ;;  %v416_v51 = vmul.f32 %v1727_v49, %v1727_v49 }
  0xd9   :  { %v1733_v52 = vpop.f32.mrb[0].mxu1  ;;  %v415_v53 = vmul.f32 %v1729_v50, %v1729_v50 }
  0xda   :  { %433 = vadd.xlane.f32.xlu1 %v416_v51  ;;  %v1737_v54 = vpop.f32.mrb[1].mxu1  ;;  %v424_v55 = vmul.f32 %v1733_v52, %v1733_v52  ;;  %v1805_v51 = vpop.xlane.xlu0 %264 }
  0xdb   :  { %431 = vadd.xlane.f32.xlu0 %v415_v53  ;;  %v1741_v56 = vpop.f32.mrb[2].mxu0  ;;  %v423_v57 = vmul.f32 %v1737_v54, %v1737_v54  ;;  %v1357_v53 = vpop.eup %1356  ;;  %1366 = vrsqrt.f32 %v1805_v51  ;;  %vm345_vm3 = vcmp.eq.f32.partialorder %v1805_v51, inf  ;;  %vm347_vm4 = vcmp.eq.f32.partialorder %v1805_v51, 0.0 }
  0xdc   :  { %v1745_v58 = vpop.f32.mrb[3].mxu0  ;;  %v418_v60 = vmul.f32 %v1741_v56, %v1741_v56  ;;  %1368 = vrcp.f32 %v399_v47 }
  0xdd   :  { %v1747_v59 = vpop.f32.mrb[2].mxu1  ;;  %v417_v62 = vmul.f32 %v1745_v58, %v1745_v58 }
  0xde   :  { %449 = vadd.xlane.f32.xlu1 %v424_v55  ;;  %v1751_v61 = vpop.f32.mrb[3].mxu1  ;;  %v426_v2 = vmul.f32 %v1747_v59, %v1747_v59  ;;  %v323_v55 = vmul.f32 %v1355_v43, %v1791_v22 }
  0xdf   :  { %447 = vadd.xlane.f32.xlu0 %v423_v57  ;;  %v1755_v63 = vpop.f32.mrb[4].mxu0  ;;  %v425_v4 = vmul.f32 %v1751_v61, %v1751_v61  ;;  %v402_v57 = vmax.f32 %v314_v44, 1e-15 }
  0xe0   :  { %2575 = vst [vmem:[#allocation5_spill] sm:$0xff] %v1755_v63  ;;  %v1757_v0 = vpop.f32.mrb[5].mxu0  ;;  %v420_v8 = vmul.f32 %v1755_v63, %v1755_v63 }
  0xe1   :  { %2576 = vst [vmem:[#allocation6_spill] sm:$0xff] %v1757_v0  ;;  %v1759_v1 = vpop.f32.mrb[4].mxu1  ;;  %v419_v10 = vmul.f32 %v1757_v0, %v1757_v0 }
  0xe2   :  { %2577 = vst [vmem:[#allocation7_spill] sm:$0xff] %v1759_v1  ;;  %437 = vadd.xlane.f32.xlu1 %v418_v60  ;;  %v1763_v3 = vpop.f32.mrb[5].mxu1  ;;  %v428_v11 = vmul.f32 %v1759_v1, %v1759_v1  ;;  %v1809_v60 = vpop.xlane.xlu1 %273 }
  0xe3   :  { %2578 = vst [vmem:[#allocation8_spill] sm:$0xff] %v1763_v3  ;;  %435 = vadd.xlane.f32.xlu0 %v417_v62  ;;  %v1767_v5 = vpop.f32.mrb[6].mxu0  ;;  %v427_v12 = vmul.f32 %v1763_v3, %v1763_v3  ;;  %v1811_v62 = vsel %vm298_vm8, %v299_v45, %v297_v48  ;;  %1370 = vrsqrt.f32 %v1809_v60  ;;  %vm366_vm5 = vcmp.eq.f32.partialorder %v1809_v60, inf }
  0xe4   :  { %2579 = vst [vmem:[#allocation9_spill] sm:$0xff] %v1767_v5  ;;  %v1769_v6 = vpop.f32.mrb[7].mxu0  ;;  %v422_v13 = vmul.f32 %v1767_v5, %v1767_v5  ;;  %vm368_vm7 = vcmp.eq.f32.partialorder %v1809_v60, 0.0 }
  0xe5   :  { %2580 = vst [vmem:[#allocation10_spill] sm:$0xff] %v1769_v6  ;;  %v1771_v7 = vpop.f32.mrb[6].mxu1  ;;  %v421_v14 = vmul.f32 %v1769_v6, %v1769_v6 }
  0xe6   :  { %2581 = vst [vmem:[#allocation11_spill] sm:$0xff] %v1771_v7  ;;  %453 = vadd.xlane.f32.xlu1 %v426_v2  ;;  %v1775_v9 = vpop.f32.mrb[7].mxu1  ;;  %v430_v15 = vmul.f32 %v1771_v7, %v1771_v7  ;;  %v327_v2 = vand.u32 2147483648, %v1791_v22 }
  0xe7   :  { %2582 = vst [vmem:[#allocation12_spill] sm:$0xff] %v1775_v9  ;;  %451 = vadd.xlane.f32.xlu0 %v425_v4  ;;  %v429_v16 = vmul.f32 %v1775_v9, %v1775_v9  ;;  %v657_v4 = vadd.f32 1.0, %v1189_v46 }
  0xe9   :  { %1372 = vlog2.f32 %v657_v4 }
  0xea   :  { %441 = vadd.xlane.f32.xlu1 %v420_v8  ;;  %v1187_v8 = vclamps-f32 %v399_v47, 0.9999999 }
  0xeb   :  { %439 = vadd.xlane.f32.xlu0 %v419_v10  ;;  %v316_v10 = vmul.f32 %v1357_v53, %v1794_v25 }
  0xec   :  { %v655_v19 = vadd.f32 1.0, %v1187_v8  ;;  %v703_v23 = vsub.f32 1.0, %v1187_v8 }
  0xed   :  { %v318_v21 = vsel %vm317_vm11, %v1794_v25, %v316_v10  ;;  %v334_v25 = vand.u32 2147483648, %v1799_v36 }
  0xee   :  { %457 = vadd.xlane.f32.xlu1 %v428_v11  ;;  %v325_v11 = vsel %vm324_vm9, %v1791_v22, %v323_v55  ;;  %v1827_v22 = vpop.xlane.xlu1 %279  ;;  %v1834_v29 = vsel %vm319_vm12, %v320_v17, %v318_v21  ;;  %v355_v55 = vand.u32 2147483648, %v1801_v41 }
  0xef   :  { %455 = vadd.xlane.f32.xlu0 %v427_v12  ;;  %v705_v12 = vsub.f32 1.0, %v1189_v46  ;;  %v328_v20 = vsel %vm326_vm10, %v327_v2, %v325_v11  ;;  %v403_v38 = vmax.f32 %v1834_v29, 1e-15  ;;  %vm380_vm8 = vcmp.eq.f32.partialorder %v1827_v22, inf }
  0xf0   :  { %v404_v28 = vmax.f32 %v328_v20, 1e-15  ;;  %vm382_vm10 = vcmp.eq.f32.partialorder %v1827_v22, 0.0 }
  0xf2   :  { %445 = vadd.xlane.f32.xlu1 %v422_v13  ;;  %v1190_v13 = vclamps-f32 %v402_v57, 0.9999999  ;;  %v1192_v43 = vclamps-f32 %v404_v28, 0.9999999 }
  0xf3   :  { %443 = vadd.xlane.f32.xlu0 %v421_v14  ;;  %v400_v14 = vmax.f32 %v1811_v62, 1e-15  ;;  %v1870_v62 = vclamps-f32 %v403_v38, 0.9999999 }
  0xf4   :  { %v658_v24 = vadd.f32 1.0, %v1190_v13  ;;  %v706_v34 = vsub.f32 1.0, %v1190_v13  ;;  %v660_v8 = vadd.f32 1.0, %v1192_v43  ;;  %v708_v10 = vsub.f32 1.0, %v1192_v43 }
  0xf5   :  { %v1188_v26 = vclamps-f32 %v400_v14, 0.9999999  ;;  %v659_v20 = vadd.f32 1.0, %v1870_v62  ;;  %v707_v21 = vsub.f32 1.0, %v1870_v62 }
  0xf6   :  { %461 = vadd.xlane.f32.xlu1 %v430_v15  ;;  %v1821_v15 = vpop.xlane.xlu0 %270 }
  0xf7   :  { %459 = vadd.xlane.f32.xlu0 %v429_v16  ;;  %v1359_v16 = vpop.eup %1358  ;;  %1374 = vrsqrt.f32 %v1821_v15  ;;  %v656_v42 = vadd.f32 1.0, %v1188_v26  ;;  %v704_v46 = vsub.f32 1.0, %v1188_v26  ;;  %vm359_vm6 = vcmp.eq.f32.partialorder %v1821_v15, inf }
  0xf8   :  { %v1361_v18 = vpop.eup %1360  ;;  %1376 = vlog2.f32 %v705_v12  ;;  %v337_v27 = vmul.f32 %v1359_v16, %v1796_v30  ;;  %vm361_vm9 = vcmp.eq.f32.partialorder %v1821_v15, 0.0 }
  0xf9   :  { %v330_v31 = vmul.f32 %v1361_v18, %v1799_v36  ;;  %1378 = vrsqrt.f32 %v1827_v22  ;;  %v1363_v33 = vpop.eup %1362  ;;  %v348_v18 = vand.u32 2147483648, %v1805_v51 }
  0xfa   :  { %1380 = vlog2.f32 %v655_v19  ;;  %v1843_v35 = vpop.xlane.xlu0 %276  ;;  %v1845_v37 = vpop.eup %1364  ;;  %v339_v39 = vsel %vm338_vm13, %v1796_v30, %v337_v27  ;;  %v351_v47 = vmul.f32 %v1363_v33, %v1801_v41 }
  0xfb   :  { %1382 = vlog2.f32 %v703_v23  ;;  %v1367_v40 = vpop.eup %1366  ;;  %v332_v44 = vsel %vm331_vm15, %v1799_v36, %v330_v31  ;;  %v1862_v53 = vsel %vm340_vm14, %v341_v32, %v339_v39  ;;  %vm373_vm11 = vcmp.eq.f32.partialorder %v1843_v35, inf }
  0xfc   :  { %1384 = vrcp.f32 %v402_v57  ;;  %v1855_v45 = vpop.eup %1368  ;;  %v1874_v2 = vsel %vm333_vm0, %v334_v25, %v332_v44  ;;  %v344_v4 = vmul.f32 %v1367_v40, %v1805_v51  ;;  %v406_v12 = vmax.f32 %v1862_v53, 1e-15 }
  0xfd   :  { %1386 = vlog2.f32 %v658_v24  ;;  %v1371_v48 = vpop.eup %1370  ;;  %v353_v13 = vsel %vm352_vm1, %v1801_v41, %v351_v47  ;;  %v405_v17 = vmax.f32 %v1874_v2, 1e-15  ;;  %v362_v40 = vand.u32 2147483648, %v1821_v15 }
  0xfe   :  { %1388 = vrsqrt.f32 %v1843_v35  ;;  %v1866_v57 = vpop.eup %1372  ;;  %v365_v36 = vmul.f32 %v1371_v48, %v1809_v60  ;;  %v346_v23 = vsel %vm345_vm3, %v1805_v51, %v344_v4  ;;  %v1902_v27 = vsel %vm354_vm2, %v355_v55, %v353_v13  ;;  %v1912_v25 = vpop.xlane.xlu0 %282 }
  0xff   :  { %1390 = vlog2.f32 %v706_v34  ;;  %v1194_v32 = vclamps-f32 %v406_v12, 0.9999999  ;;  %v1918_v39 = vsel %vm347_vm4, %v348_v18, %v346_v23  ;;  %v408_v43 = vmax.f32 %v1902_v27, 1e-15 }
 0x100   :  { %1392 = vrcp.f32 %v400_v14  ;;  %v1885_v14 = vpop.xlane.xlu1 %285  ;;  %v367_v33 = vsel %vm366_vm5, %v1809_v60, %v365_v36  ;;  %v1931_v51 = vclamps-f32 %v405_v17, 0.9999999  ;;  %v383_v47 = vand.u32 2147483648, %v1827_v22 }
 0x101   :  { %v1375_v30 = vpop.eup %1374  ;;  %1394 = vlog2.f32 %v656_v42  ;;  %v662_v53 = vadd.f32 1.0, %v1194_v32  ;;  %v407_v55 = vmax.f32 %v1918_v39, 1e-15  ;;  %v710_v4 = vsub.f32 1.0, %v1194_v32 }
 0x102   :  { %v1878_v11 = vpop.eup %1376  ;;  %1396 = vlog2.f32 %v704_v46  ;;  %v358_v24 = vmul.f32 %v1375_v30, %v1821_v15  ;;  %v1196_v13 = vclamps-f32 %v408_v43, 0.9999999  ;;  %v376_v18 = vand.u32 2147483648, %v1843_v35 }
 0x103   :  { %v1379_v16 = vpop.eup %1378  ;;  %1398 = vrcp.f32 %v404_v28  ;;  %v369_v28 = vand.u32 2147483648, %v1809_v60  ;;  %v661_v23 = vadd.f32 1.0, %v1931_v51  ;;  %vm375_vm12 = vcmp.eq.f32.partialorder %v1843_v35, 0.0 }
 0x104   :  { %v1890_v19 = vpop.eup %1380  ;;  %1400 = vrsqrt.f32 %v1885_v14  ;;  %v379_v34 = vmul.f32 %v1379_v16, %v1827_v22  ;;  %v360_v60 = vsel %vm359_vm6, %v1821_v15, %v358_v24  ;;  %vm394_vm13 = vcmp.eq.f32.partialorder %v1885_v14, inf }
 0x105   :  { %v1898_v26 = vpop.eup %1382  ;;  %1402 = vlog2.f32 %v660_v8  ;;  %v1933_v46 = vsel %vm368_vm7, %v369_v28, %v367_v33  ;;  %v1946_v30 = vsel %vm361_vm9, %v362_v40, %v360_v60  ;;  %v712_v33 = vsub.f32 1.0, %v1196_v13 }
 0x106   :  { %v1907_v31 = vpop.eup %1384  ;;  %1404 = vlog2.f32 %v708_v10  ;;  %v381_v62 = vsel %vm380_vm8, %v1827_v22, %v379_v34  ;;  %v2563_v36 = vmax.f32 %v1933_v46, 1e-15  ;;  %v2562_v16 = vmax.f32 %v1946_v30, 1e-15 }
 0x107   :  { %v1914_v41 = vpop.eup %1386  ;;  %1406 = vrsqrt.f32 %v1912_v25  ;;  %v1957_v29 = vsel %vm382_vm10, %v383_v47, %v381_v62  ;;  %vm396_vm14 = vcmp.eq.f32.partialorder %v1885_v14, 0.0  ;;  %vm387_vm15 = vcmp.eq.f32.partialorder %v1912_v25, inf }
 0x108   :  { %v1389_v42 = vpop.eup %1388  ;;  %1408 = vrcp.f32 %v403_v38  ;;  %v1195_v38 = vclamps-f32 %v407_v55, 0.9999999  ;;  %v2561_v28 = vmax.f32 %v1957_v29, 1e-15  ;;  %vm389_vm0 = vcmp.eq.f32.partialorder %v1912_v25, 0.0 }
 0x109   :  { %v1927_v44 = vpop.eup %1390  ;;  %v372_v8 = vmul.f32 %v1389_v42, %v1843_v35  ;;  %1410 = vlog2.f32 %v659_v20  ;;  %v1197_v42 = vclamps-f32 %v2562_v16, 0.9999999  ;;  %v2027_v39 = vmul.f32 0.6931472, %v1890_v19 }
 0x10a   :  { %v1937_v48 = vpop.eup %1392  ;;  %1412 = vlog2.f32 %v707_v21  ;;  %v664_v21 = vadd.f32 1.0, %v1196_v13  ;;  %v663_v40 = vadd.f32 1.0, %v1195_v38  ;;  %v1200_v2 = vclamps-f32 %v2561_v28, 0.9999999 }
 0x10b   :  { %v1942_v15 = vpop.eup %1394  ;;  %1414 = vrcp.f32 %v406_v12  ;;  %v374_v24 = vsel %vm373_vm11, %v1843_v35, %v372_v8  ;;  %v1198_v12 = vclamps-f32 %v2563_v36, 0.9999999  ;;  %v397_v13 = vand.u32 2147483648, %v1885_v14 }
 0x10c   :  { %v1949_v10 = vpop.eup %1396  ;;  %1416 = vlog2.f32 %v662_v53  ;;  %v1977_v35 = vsel %vm375_vm12, %v376_v18, %v374_v24  ;;  %v711_v53 = vsub.f32 1.0, %v1195_v38  ;;  %v665_v38 = vadd.f32 1.0, %v1197_v42 }
 0x10d   :  { %v1955_v22 = vpop.eup %1398  ;;  %1418 = vlog2.f32 %v710_v4  ;;  %v666_v62 = vadd.f32 1.0, %v1198_v12  ;;  %v714_v4 = vsub.f32 1.0, %v1198_v12  ;;  %v2564_v8 = vmax.f32 %v1977_v35, 1e-15 }
 0x10e   :  { %v1401_v20 = vpop.eup %1400  ;;  %1420 = vrcp.f32 %v405_v17  ;;  %v668_v12 = vadd.f32 1.0, %v1200_v2  ;;  %v716_v36 = vsub.f32 1.0, %v1200_v2 }
 0x10f   :  { %v1969_v32 = vpop.eup %1402  ;;  %v393_v60 = vmul.f32 %v1401_v20, %v1885_v14  ;;  %1422 = vlog2.f32 %v661_v23 }
 0x110   :  { %v1973_v34 = vpop.eup %1404  ;;  %1424 = vlog2.f32 %v664_v21  ;;  %v713_v21 = vsub.f32 1.0, %v1197_v42  ;;  %v709_v42 = vsub.f32 1.0, %v1931_v51  ;;  %v674_v51 = vmul.f32 0.6931472, %v1942_v15 }
 0x111   :  { %v1407_v47 = vpop.eup %1406  ;;  %1426 = vlog2.f32 %v712_v33  ;;  %v395_v20 = vsel %vm394_vm13, %v1885_v14, %v393_v60  ;;  %v390_v33 = vand.u32 2147483648, %v1912_v25 }
 0x112   :  { %v1984_v17 = vpop.eup %1408  ;;  %1428 = vlog2.f32 %v663_v40  ;;  %v386_v23 = vmul.f32 %v1407_v47, %v1912_v25  ;;  %v1199_v40 = vclamps-f32 %v2564_v8, 0.9999999  ;;  %v398_v60 = vsel %vm396_vm14, %v397_v13, %v395_v20 }
 0x113   :  { %v1988_v18 = vpop.eup %1410  ;;  %1430 = vlog2.f32 %v711_v53  ;;  %v414_v2 = vmax.f32 %v398_v60, 1e-15  ;;  %v1007_v13 = vlaneseq }
 0x114   :  { %v1413_v24 = vpop.eup %1412  ;;  %1432 = vlog2.f32 %v666_v62  ;;  %v388_v53 = vsel %vm387_vm15, %v1912_v25, %v386_v23  ;;  %v667_v8 = vadd.f32 1.0, %v1199_v40  ;;  %v715_v23 = vsub.f32 1.0, %v1199_v40 }
 0x115   :  { %v1993_v28 = vpop.eup %1414  ;;  %1434 = vlog2.f32 %v714_v4  ;;  %v2009_v14 = vsel %vm389_vm0, %v390_v33, %v388_v53  ;;  %v2018_v60 = vand.u32 127, %v1007_v13  ;;  %v2024_v40 = vmul.f32 0.6931472, %v1878_v11 }
 0x116   :  { %2583 = vst [vmem:[#allocation13_spill] sm:$0xff] %v1993_v28  ;;  %v1417_v16 = vpop.eup %1416  ;;  %1436 = vlog2.f32 %v665_v38  ;;  %2585 = vst [vmem:[#allocation15_spill] sm:$0xff] %v2009_v14  ;;  %v722_v38 = vmul.f32 0.6931472, %v1949_v10  ;;  %v2021_v10 = vmul.f32 0.6931472, %v1866_v57 }
 0x117   :  { %v2000_v47 = vpop.eup %1418  ;;  %1438 = vlog2.f32 %v713_v21  ;;  %v2038_v53 = vmul.f32 0.6931472, %v1927_v44  ;;  %v2587_v11 = vmax.f32 %v1946_v30, 1e-15  ;;  %v2055_v30 = vmul.f32 0.6931472, %v1413_v24 }
 0x118   :  { %v2005_v62 = vpop.eup %1420  ;;  %1440 = vlog2.f32 %v668_v12  ;;  %v2565_v12 = vmax.f32 %v2009_v14, 1e-15  ;;  %v752_v27 = vsub.f32 %v674_v51, %v722_v38 }
 0x119   :  { %2584 = vst [vmem:[#allocation14_spill] sm:$0xff] %v2005_v62  ;;  %v2007_v4 = vpop.eup %1422  ;;  %1442 = vlog2.f32 %v716_v36  ;;  %v1202_v36 = vclamps-f32 %v414_v2, 0.9999999 }
 0x11a   :  { %v1425_v20 = vpop.eup %1424  ;;  %1444 = vlog2.f32 %v709_v42  ;;  %v2586_v42 = vmax.f32 %v1933_v46, 1e-15  ;;  %v1201_v19 = vclamps-f32 %v2565_v12, 0.9999999  ;;  %v2588_v46 = vmax.f32 %v1957_v29, 1e-15 }
 0x11b   :  { %v1427_v25 = vpop.eup %1426  ;;  %1446 = vrcp.f32 %v408_v43  ;;  %v670_v13 = vadd.f32 1.0, %v1202_v36  ;;  %v718_v38 = vsub.f32 1.0, %v1202_v36  ;;  %v2061_v12 = vmul.f32 0.6931472, %v1417_v16 }
 0x11c   :  { %v1429_v21 = vpop.eup %1428  ;;  %1448 = vrcp.f32 %v407_v55  ;;  %v2030_v55 = vmul.f32 0.6931472, %v1898_v26  ;;  %v2045_v26 = vmul.f32 0.6931472, %v1969_v32  ;;  %v738_v9 = vmul.f32 0.6931472, %v1427_v25 }
 0x11d   :  { %v1431_v33 = vpop.eup %1430  ;;  %1450 = vlog2.f32 %v667_v8  ;;  %v2033_v8 = vmul.f32 0.6931472, %v1914_v41  ;;  %v2048_v41 = vmul.f32 0.6931472, %v1973_v34  ;;  %v690_v34 = vmul.f32 0.6931472, %v1425_v20 }
 0x11e   :  { %v1433_v15 = vpop.eup %1432  ;;  %1452 = vlog2.f32 %v715_v23  ;;  %v2053_v23 = vmul.f32 0.6931472, %v1988_v18  ;;  %v736_v36 = vmul.f32 0.6931472, %v1431_v33  ;;  %v669_v7 = vadd.f32 1.0, %v1201_v19 }
 0x11f   :  { %v1435_v43 = vpop.eup %1434  ;;  %1454 = vrcp.f32 %v2586_v42  ;;  %v2589_v42 = vmax.f32 %v1977_v35, 1e-15  ;;  %v694_v24 = vmul.f32 0.6931472, %v1433_v15  ;;  %v2076_v33 = vmul.f32 0.6931472, %v2007_v4 }
 0x120   :  { %v1437_v57 = vpop.eup %1436  ;;  %1456 = vrcp.f32 %v2587_v11  ;;  %v2059_v11 = vmul.f32 0.5, %v752_v27  ;;  %v742_v3 = vmul.f32 0.6931472, %v1435_v43  ;;  %v751_v15 = vsub.f32 %v2027_v39, %v2030_v55 }
 0x121   :  { %v1439_v51 = vpop.eup %1438  ;;  %1458 = vrcp.f32 %v2588_v46  ;;  %v688_v46 = vmul.f32 0.6931472, %v1429_v21  ;;  %v692_v1 = vmul.f32 0.6931472, %v1437_v57  ;;  %v2073_v21 = vmul.f32 0.6931472, %v2000_v47 }
 0x122   :  { %v1441_v44 = vpop.eup %1440  ;;  %1460 = vrcp.f32 %v2589_v42  ;;  %v740_v16 = vmul.f32 0.6931472, %v1439_v51  ;;  %v717_v57 = vsub.f32 1.0, %v1201_v19  ;;  %v753_v51 = vsub.f32 %v2021_v10, %v2024_v40 }
 0x123   :  { %v1443_v32 = vpop.eup %1442  ;;  %1462 = vrcp.f32 %v414_v2  ;;  %v698_v42 = vmul.f32 0.6931472, %v1441_v44  ;;  %v760_v47 = vsub.f32 %v690_v34, %v738_v9  ;;  %v759_v4 = vsub.f32 %v688_v46, %v736_v36 }
 0x124   :  { %v1445_v29 = vpop.eup %1444  ;;  %1464 = vlog2.f32 %v670_v13  ;;  %v746_v20 = vmul.f32 0.6931472, %v1443_v32  ;;  %v754_v13 = vsub.f32 %v2033_v8, %v2038_v53  ;;  %v762_v32 = vsub.f32 %v694_v24, %v742_v3 }
 0x125   :  { %v2063_v18 = vpop.eup %1446  ;;  %1466 = vlog2.f32 %v718_v38  ;;  %v756_v39 = vsub.f32 %v2045_v26, %v2048_v41  ;;  %v761_v8 = vsub.f32 %v692_v1, %v740_v16  ;;  %v755_v10 = vsub.f32 %v2053_v23, %v2055_v30 }
 0x126   :  { %v2067_v27 = vpop.eup %1448  ;;  %v764_v40 = vsub.f32 %v698_v42, %v746_v20  ;;  %v2100_v9 = vmul.f32 0.6931472, %v1445_v29  ;;  %v2109_v41 = vmul.f32 0.5, %v751_v15  ;;  %v2111_v1 = vmul.f32 0.5, %v754_v13 }
 0x127   :  { %v1451_v25 = vpop.eup %1450  ;;  %v2113_v34 = vmul.f32 0.5, %v753_v51  ;;  %v2117_v30 = vmul.f32 0.5, %v760_v47  ;;  %v2119_v29 = vmul.f32 0.5, %v759_v4  ;;  %v2123_v36 = vmul.f32 0.5, %v762_v32 }
 0x128   :  { %v1453_v43 = vpop.eup %1452  ;;  %v2102_v19 = vmul.f32 0.6931472, %v1451_v25  ;;  %v2125_v24 = vmul.f32 0.5, %v756_v39  ;;  %v2132_v20 = vmul.f32 0.5, %v761_v8  ;;  %v2134_v25 = vmul.f32 0.5, %v755_v10 }
 0x129   :  { %v2085_v38 = vpop.eup %1454  ;;  %v2104_v3 = vmul.f32 0.6931472, %v1453_v43  ;;  %v2136_v15 = vmul.f32 0.5, %v764_v40 }
 0x12a   :  { %v2091_v55 = vpop.eup %1456 }
 0x12b   :  { %v2098_v53 = vpop.eup %1458  ;;  %2593 = vst [vmem:[#allocation19_spill] sm:$0xff] %v2136_v15 }
 0x12c   :  { %2590 = vst [vmem:[#allocation16_spill] sm:$0xff] %v2098_v53  ;;  %v2107_v26 = vpop.eup %1460 }
 0x12d   :  { %2591 = vst [vmem:[#allocation17_spill] sm:$0xff] %v2107_v26  ;;  %v2115_v23 = vpop.eup %1462 }
 0x12e   :  { %2592 = vst [vmem:[#allocation18_spill] sm:$0xff] %v2115_v23  ;;  %v2127_v16 = vpop.eup %1464 }
 0x12f   :  { %v2138_v43 = vpop.eup %1466 }
 0x167   :  { %v2065_v35 = vpop.xlane.xlu1 %433 }
 0x168   :  { %1468 = vrsqrt.f32 %v2065_v35  ;;  %v2070_v2 = vpop.xlane.xlu0 %431  ;;  %vm472_vm1 = vcmp.eq.f32.partialorder %v2065_v35, inf  ;;  %vm474_vm2 = vcmp.eq.f32.partialorder %v2065_v35, 0.0  ;;  %v475_v4 = vand.u32 2147483648, %v2065_v35 }
 0x169   :  { %1470 = vrsqrt.f32 %v2070_v2  ;;  %vm465_vm3 = vcmp.eq.f32.partialorder %v2070_v2, inf  ;;  %vm467_vm4 = vcmp.eq.f32.partialorder %v2070_v2, 0.0  ;;  %v468_v8 = vand.u32 2147483648, %v2070_v2 }
 0x16a   :  { %1472 = vlog2.f32 %v669_v7 }
 0x16b   :  { %v2087_v44 = vpop.xlane.xlu1 %449 }
 0x16c   :  { %1474 = vrsqrt.f32 %v2087_v44  ;;  %v2094_v7 = vpop.xlane.xlu0 %447  ;;  %vm528_vm5 = vcmp.eq.f32.partialorder %v2087_v44, inf  ;;  %vm530_vm6 = vcmp.eq.f32.partialorder %v2087_v44, 0.0  ;;  %v531_v51 = vand.u32 2147483648, %v2087_v44 }
 0x16d   :  { %1476 = vrsqrt.f32 %v2094_v7  ;;  %vm521_vm7 = vcmp.eq.f32.partialorder %v2094_v7, inf  ;;  %vm523_vm8 = vcmp.eq.f32.partialorder %v2094_v7, 0.0  ;;  %v524_v0 = vand.u32 2147483648, %v2094_v7 }
 0x16e   :  { %1478 = vlog2.f32 %v717_v57 }
 0x16f   :  { %v2121_v46 = vpop.xlane.xlu1 %437 }
 0x170   :  { %1480 = vrsqrt.f32 %v2121_v46  ;;  %v2130_v42 = vpop.xlane.xlu0 %435  ;;  %vm486_vm9 = vcmp.eq.f32.partialorder %v2121_v46, inf  ;;  %vm488_vm10 = vcmp.eq.f32.partialorder %v2121_v46, 0.0  ;;  %v489_v62 = vand.u32 2147483648, %v2121_v46 }
 0x171   :  { %1482 = vrsqrt.f32 %v2130_v42  ;;  %vm479_vm11 = vcmp.eq.f32.partialorder %v2130_v42, inf  ;;  %vm481_vm12 = vcmp.eq.f32.partialorder %v2130_v42, 0.0 }
 0x172   :  { %v1469_v47 = vpop.eup %1468 }
 0x173   :  { %v1471_v32 = vpop.eup %1470  ;;  %v471_v39 = vmul.f32 %v1469_v47, %v2065_v35  ;;  %v2155_v10 = vpop.xlane.xlu1 %453 }
 0x174   :  { %v2157_v40 = vpop.eup %1472  ;;  %v464_v57 = vmul.f32 %v1471_v32, %v2070_v2  ;;  %1484 = vrsqrt.f32 %v2155_v10  ;;  %v2163_v13 = vpop.xlane.xlu0 %451  ;;  %vm542_vm13 = vcmp.eq.f32.partialorder %v2155_v10, inf  ;;  %vm544_vm14 = vcmp.eq.f32.partialorder %v2155_v10, 0.0 }
 0x175   :  { %2594 = vst [vmem:[#allocation20_spill] sm:$0xff] %v2157_v40  ;;  %v473_v47 = vsel %vm472_vm1, %v2065_v35, %v471_v39  ;;  %1486 = vrsqrt.f32 %v2163_v13  ;;  %vm535_vm15 = vcmp.eq.f32.partialorder %v2163_v13, inf  ;;  %vm537_vm0 = vcmp.eq.f32.partialorder %v2163_v13, 0.0 }
 0x176   :  { %v1475_v6 = vpop.eup %1474  ;;  %v476_v32 = vsel %vm474_vm2, %v475_v4, %v473_v47  ;;  %v466_v5 = vsel %vm465_vm3, %v2070_v2, %v464_v57 }
 0x177   :  { %v1477_v40 = vpop.eup %1476  ;;  %v576_v39 = vmax.f32 %v476_v32, 1e-15  ;;  %v469_v14 = vsel %vm467_vm4, %v468_v8, %v466_v5  ;;  %v527_v63 = vmul.f32 %v1475_v6, %v2087_v44  ;;  %v2182_v23 = vpop.xlane.xlu1 %441 }
 0x178   :  { %v2184_v4 = vpop.eup %1478  ;;  %v575_v47 = vmax.f32 %v469_v14, 1e-15  ;;  %v520_v57 = vmul.f32 %v1477_v40, %v2094_v7  ;;  %1488 = vrsqrt.f32 %v2182_v23  ;;  %vm500_vm1 = vcmp.eq.f32.partialorder %v2182_v23, inf }
 0x179   :  { %2595 = vst [vmem:[#allocation21_spill] sm:$0xff] %v2184_v4  ;;  %v594_v32 = vmul.f32 %v1937_v48, %v576_v39  ;;  %v529_v5 = vsel %vm528_vm5, %v2087_v44, %v527_v63  ;;  %v482_v48 = vand.u32 2147483648, %v2130_v42  ;;  %vm502_vm3 = vcmp.eq.f32.partialorder %v2182_v23, 0.0 }
 0x17a   :  { %v1481_v6 = vpop.eup %1480  ;;  %v592_v8 = vmul.f32 %v1855_v45, %v575_v47  ;;  %v532_v14 = vsel %vm530_vm6, %v531_v51, %v529_v5  ;;  %v522_v40 = vsel %vm521_vm7, %v2094_v7, %v520_v57  ;;  %v545_v5 = vand.u32 2147483648, %v2155_v10 }
 0x17b   :  { %v1483_v4 = vpop.eup %1482  ;;  %v784_v28 = vmul.f32 %v2059_v11, %v594_v32  ;;  %v584_v63 = vmax.f32 %v532_v14, 1e-15  ;;  %v525_v26 = vsel %vm523_vm8, %v524_v0, %v522_v40  ;;  %v485_v15 = vmul.f32 %v1481_v6, %v2121_v46 }
 0x17c   :  { %v783_v45 = vmul.f32 %v2109_v41, %v592_v8  ;;  %v583_v53 = vmax.f32 %v525_v26, 1e-15  ;;  %v478_v51 = vmul.f32 %v1483_v4, %v2130_v42  ;;  %vm1025_vm5 = vcmp.eq.s32.totalorder %v2018_v60, 32 }
 0x17d   :  { %1490 = vtanh.f32 %v784_v28  ;;  %v610_v57 = vmul.f32 %v2063_v18, %v584_v63  ;;  %v487_v11 = vsel %vm486_vm9, %v2121_v46, %v485_v15 }
 0x17e   :  { %v1485_v32 = vpop.eup %1484  ;;  %1492 = vtanh.f32 %v783_v45  ;;  %v608_v0 = vmul.f32 %v2067_v27, %v583_v53  ;;  %v2217_v26 = vsel %vm488_vm10, %v489_v62, %v487_v11  ;;  %v480_v28 = vsel %vm479_vm11, %v2130_v42, %v478_v51 }
 0x17f   :  { %v1487_v41 = vpop.eup %1486  ;;  %v792_v18 = vmul.f32 %v2117_v30, %v610_v57  ;;  %v578_v4 = vmax.f32 %v2217_v26, 1e-15  ;;  %v2226_v15 = vsel %vm481_vm12, %v482_v48, %v480_v28  ;;  %v541_v6 = vmul.f32 %v1485_v32, %v2155_v10 }
 0x180   :  { %v791_v27 = vmul.f32 %v2119_v29, %v608_v0  ;;  %v577_v62 = vmax.f32 %v2226_v15, 1e-15  ;;  %v534_v30 = vmul.f32 %v1487_v41, %v2163_v13  ;;  %v538_v48 = vand.u32 2147483648, %v2163_v13 }
 0x181   :  { %1494 = vtanh.f32 %v792_v18  ;;  %v598_v8 = vmul.f32 %v1907_v31, %v578_v4  ;;  %v543_v29 = vsel %vm542_vm13, %v2155_v10, %v541_v6 }
 0x182   :  { %v1489_v14 = vpop.eup %1488  ;;  %1496 = vtanh.f32 %v791_v27  ;;  %v596_v40 = vmul.f32 %v1845_v37, %v577_v62  ;;  %v546_v31 = vsel %vm544_vm14, %v545_v5, %v543_v29  ;;  %v536_v51 = vsel %vm535_vm15, %v2163_v13, %v534_v30 }
 0x183   :  { %1498 = vrcp.f32 %v576_v39  ;;  %v786_v45 = vmul.f32 %v2111_v1, %v598_v8  ;;  %v586_v11 = vmax.f32 %v546_v31, 1e-15  ;;  %v539_v37 = vsel %vm537_vm0, %v538_v48, %v536_v51 }
 0x184   :  { %1500 = vrcp.f32 %v575_v47  ;;  %v785_v57 = vmul.f32 %v2113_v34, %v596_v40  ;;  %v585_v32 = vmax.f32 %v539_v37, 1e-15  ;;  %v499_v0 = vmul.f32 %v1489_v14, %v2182_v23  ;;  %v2256_v47 = vpop.xlane.xlu0 %439 }
 0x185   :  { %1502 = vtanh.f32 %v786_v45  ;;  %v2596_v39 = vsub.f32 %v2061_v12, %v2073_v21  ;;  %v614_v26 = vmul.f32 %v2085_v38, %v586_v11  ;;  %v2597_v34 = vsub.f32 %v2076_v33, %v2100_v9 }
 0x186   :  { %1504 = vtanh.f32 %v785_v57  ;;  %v612_v18 = vmul.f32 %v2091_v55, %v585_v32  ;;  %v501_v12 = vsel %vm500_vm1, %v2182_v23, %v499_v0  ;;  %v2598_v21 = vsub.f32 %v2102_v19, %v2104_v3 }
 0x187   :  { %v2252_v1 = vmul.f32 0.5, %v2596_v39  ;;  %v2261_v28 = vmul.f32 0.5, %v2597_v34  ;;  %v1491_v41 = vpop.eup %1490  ;;  %1506 = vrcp.f32 %v584_v63  ;;  %v794_v27 = vmul.f32 %v2123_v36, %v614_v26 }
 0x188   :  { %v2268_v15 = vmul.f32 0.5, %v2598_v21  ;;  %v1493_v38 = vpop.eup %1492  ;;  %v816_v5 = vmin.f32 %v1491_v41, 0.996  ;;  %1508 = vrcp.f32 %v583_v53  ;;  %v503_v33 = vand.u32 2147483648, %v2182_v23  ;;  %v2290_v31 = vpop.xlane.xlu0 %455 }
 0x189   :  { %v815_v9 = vmin.f32 %v1493_v38, 0.996  ;;  %v793_v6 = vmul.f32 %v2132_v20, %v612_v18  ;;  %1510 = vrsqrt.f32 %v2256_v47  ;;  %v2280_v53 = vmul.f32 0.6931472, %v2127_v16  ;;  %v2284_v20 = vpop.xlane.xlu1 %457 }
 0x18a   :  { %v848_v55 = vsel %vm474_vm2, 0.0, %v816_v5  ;;  %1512 = vtanh.f32 %v794_v27  ;;  %v504_v19 = vsel %vm502_vm3, %v503_v33, %v501_v12  ;;  %v2287_v8 = vmul.f32 0.6931472, %v2138_v43 }
 0x18b   :  { %v1495_v3 = vpop.eup %1494  ;;  %v912_v36 = vmul.f32 %v848_v55, %v848_v55  ;;  %v847_v63 = vsel %vm467_vm4, 0.0, %v815_v9  ;;  %1514 = vtanh.f32 %v793_v6  ;;  %v496_v40 = vand.u32 2147483648, %v2256_v47 }
 0x18c   :  { %v1497_v35 = vpop.eup %1496  ;;  %v911_v30 = vmul.f32 %v847_v63, %v847_v63  ;;  %v824_v14 = vmin.f32 %v1495_v3, 0.996  ;;  %1516 = vrcp.f32 %v578_v4  ;;  %v580_v45 = vmax.f32 %v504_v19, 1e-15 }
 0x18d   :  { %v1499_v29 = vpop.eup %1498  ;;  %v928_v16 = vmul.f32 -1.0, %v912_v36  ;;  %v823_v48 = vmin.f32 %v1497_v35, 0.996  ;;  %1518 = vrcp.f32 %v577_v62  ;;  %vm493_vm2 = vcmp.eq.f32.partialorder %v2256_v47, inf }
 0x18e   :  { %v1501_v2 = vpop.eup %1500  ;;  %v927_v51 = vmul.f32 -1.0, %v911_v30  ;;  %v856_v57 = vsel %vm530_vm6, 0.0, %v824_v14  ;;  %1520 = vrcp.f32 %v586_v11  ;;  %v559_v43 = vand.u32 2147483648, %v2284_v20 }
 0x18f   :  { %v1503_v4 = vpop.eup %1502  ;;  %v944_v37 = vadd.f32 1.0, %v928_v16  ;;  %v920_v0 = vmul.f32 %v856_v57, %v856_v57  ;;  %v855_v39 = vsel %vm523_vm8, 0.0, %v823_v48  ;;  %1522 = vrcp.f32 %v585_v32 }
 0x190   :  { %v1505_v62 = vpop.eup %1504  ;;  %v943_v26 = vadd.f32 1.0, %v927_v51  ;;  %v919_v34 = vmul.f32 %v855_v39, %v855_v39  ;;  %v818_v41 = vmin.f32 %v1503_v4, 0.996  ;;  %v552_v18 = vand.u32 2147483648, %v2290_v31 }
 0x191   :  { %v1507_v44 = vpop.eup %1506  ;;  %v960_v12 = vmax.f32 %v944_v37, 1e-15  ;;  %v936_v11 = vmul.f32 -1.0, %v920_v0  ;;  %v817_v21 = vmin.f32 %v1505_v62, 0.996  ;;  %v602_v38 = vmul.f32 %v1955_v22, %v580_v45 }
 0x192   :  { %vm495_vm4 = vcmp.eq.f32.partialorder %v2256_v47, 0.0  ;;  %v1509_v5 = vpop.eup %1508  ;;  %v866_v27 = vmul.f32 %v1499_v29, %v848_v55  ;;  %v959_v33 = vmax.f32 %v943_v26, 1e-15  ;;  %v935_v7 = vmul.f32 -1.0, %v919_v34 }
 0x193   :  { %v850_v32 = vsel %vm488_vm10, 0.0, %v818_v41  ;;  %v1511_v9 = vpop.eup %1510  ;;  %1524 = vrcp.f32 %v960_v12  ;;  %v864_v6 = vmul.f32 %v1501_v2, %v847_v63  ;;  %v952_v19 = vadd.f32 1.0, %v936_v11 }
 0x194   :  { %v914_v3 = vmul.f32 %v850_v32, %v850_v32  ;;  %v1513_v36 = vpop.eup %1512  ;;  %1526 = vrcp.f32 %v959_v33  ;;  %v951_v35 = vadd.f32 1.0, %v935_v7  ;;  %v849_v22 = vsel %vm481_vm12, 0.0, %v817_v21 }
 0x195   :  { %v492_v30 = vmul.f32 %v1511_v9, %v2256_v47  ;;  %v1515_v14 = vpop.eup %1514  ;;  %v968_v55 = vmax.f32 %v952_v19, 1e-15  ;;  %v788_v16 = vmul.f32 %v2125_v24, %v602_v38  ;;  %1528 = vrcp.f32 %v580_v45 }
 0x196   :  { %v930_v29 = vmul.f32 -1.0, %v914_v3  ;;  %v1517_v46 = vpop.eup %1516  ;;  %v967_v48 = vmax.f32 %v951_v35, 1e-15  ;;  %v913_v51 = vmul.f32 %v849_v22, %v849_v22  ;;  %v826_v63 = vmin.f32 %v1513_v36, 0.996 }
 0x197   :  { %v825_v2 = vmin.f32 %v1515_v14, 0.996  ;;  %v1519_v4 = vpop.eup %1518  ;;  %v896_v37 = vmul.f32 %v1727_v49, %v866_v27  ;;  %1530 = vrcp.f32 %v968_v55  ;;  %v494_v0 = vsel %vm493_vm2, %v2256_v47, %v492_v30 }
 0x198   :  { %v946_v42 = vadd.f32 1.0, %v930_v29  ;;  %v1521_v62 = vpop.eup %1520  ;;  %vm1058_vm6 = vcmp.eq.s32.totalorder %v2018_v60, 33  ;;  %1532 = vrcp.f32 %v967_v48  ;;  %v929_v24 = vmul.f32 -1.0, %v913_v51  ;;  %v2345_v51 = vpop.xlane.xlu1 %445 }
 0x199   :  { %v858_v45 = vsel %vm544_vm14, 0.0, %v826_v63  ;;  %v2317_v26 = vsel %vm537_vm0, 0.0, %v825_v2  ;;  %v2319_v34 = vpop.eup %1522  ;;  %v895_v49 = vmul.f32 %v864_v6, %v1729_v50  ;;  %v882_v41 = vmul.f32 %v1507_v44, %v856_v57 }
 0x19a   :  { %v962_v12 = vmax.f32 %v946_v42, 1e-15  ;;  %v922_v11 = vmul.f32 %v858_v45, %v858_v45  ;;  %v945_v21 = vadd.f32 1.0, %v929_v24  ;;  %v921_v38 = vmul.f32 %v2317_v26, %v2317_v26 }
 0x19b   :  { %1534 = vtanh.f32 %v788_v16  ;;  %v2328_v10 = vsel %vm495_vm4, %v496_v40, %v494_v0  ;;  %v880_v13 = vmul.f32 %v1509_v5, %v855_v39  ;;  %v870_v27 = vmul.f32 %v1517_v46, %v850_v32 }
 0x19c   :  { %1536 = vrcp.f32 %v962_v12  ;;  %v938_v33 = vmul.f32 -1.0, %v922_v11  ;;  %v961_v7 = vmax.f32 %v945_v21, 1e-15  ;;  %v937_v50 = vmul.f32 -1.0, %v921_v38 }
 0x19d   :  { %v579_v57 = vmax.f32 %v2328_v10, 1e-15  ;;  %1538 = vrsqrt.f32 %v2284_v20  ;;  %v1525_v44 = vpop.eup %1524  ;;  %v904_v9 = vmul.f32 %v1733_v52, %v882_v41  ;;  %v868_v6 = vmul.f32 %v1519_v4, %v849_v22 }
 0x19e   :  { %v954_v19 = vadd.f32 1.0, %v938_v33  ;;  %1540 = vrsqrt.f32 %v2290_v31  ;;  %v1527_v3 = vpop.eup %1526  ;;  %v978_v40 = vmul.f32 2.0, %v1525_v44  ;;  %v953_v39 = vadd.f32 1.0, %v937_v50 }
 0x19f   :  { %1542 = vrcp.f32 %v961_v7  ;;  %v600_v5 = vmul.f32 %v1984_v17, %v579_v57  ;;  %v2337_v32 = vpop.eup %1528  ;;  %v976_v36 = vmul.f32 2.0, %v1527_v3  ;;  %v903_v35 = vmul.f32 %v880_v13, %v1737_v54 }
 0x1a0   :  { %v898_v30 = vmul.f32 %v1741_v56, %v870_v27  ;;  %v970_v52 = vmax.f32 %v954_v19, 1e-15  ;;  %v1010_v22 = vmul.f32 %v978_v40, %v896_v37  ;;  %v1204_v14 = vadd.f32 -1.0, %v978_v40 }
 0x1a1   :  { %v969_v55 = vmax.f32 %v953_v39, 1e-15  ;;  %v787_v29 = vmul.f32 %v2134_v25, %v600_v5  ;;  %vm556_vm7 = vcmp.eq.f32.partialorder %v2284_v20, inf  ;;  %v1531_v16 = vpop.eup %1530  ;;  %v1009_v46 = vmul.f32 %v976_v36, %v895_v49 }
 0x1a2   :  { %v1203_v48 = vadd.f32 -1.0, %v976_v36  ;;  %v897_v17 = vmul.f32 %v868_v6, %v1745_v58  ;;  %1544 = vrcp.f32 %v970_v52  ;;  %vm558_vm8 = vcmp.eq.f32.partialorder %v2284_v20, 0.0  ;;  %v1533_v54 = vpop.eup %1532  ;;  %v2354_v58 = vpop.xlane.xlu0 %443 }
 0x1a3   :  { %v1043_v56 = vsel %vm1025_vm5, %v1204_v14, %v1010_v22  ;;  %v994_v63 = vmul.f32 2.0, %v1531_v16  ;;  %v886_v2 = vmul.f32 %v1521_v62, %v858_v45  ;;  %1546 = vrcp.f32 %v969_v55  ;;  %v2382_v36 = vpop.xlane.xlu1 %461 }
 0x1a4   :  { %v1060_v25 = vsel %vm1058_vm6, 1.0, %v1043_v56  ;;  %v1042_v4 = vsel %vm1025_vm5, %v1203_v48, %v1009_v46  ;;  %v992_v37 = vmul.f32 2.0, %v1533_v54  ;;  %1548 = vtanh.f32 %v787_v29 }
 0x1a5   :  { %vm549_vm9 = vcmp.eq.f32.partialorder %v2290_v31, inf  ;;  %v1535_v42 = vpop.eup %1534  ;;  %v1059_v0 = vsel %vm1058_vm6, 1.0, %v1042_v4  ;;  %v1018_v24 = vmul.f32 %v994_v63, %v904_v9  ;;  %v1212_v49 = vadd.f32 -1.0, %v994_v63 }
 0x1a6   :  { %vm551_vm10 = vcmp.eq.f32.partialorder %v2290_v31, 0.0  ;;  %1550 = vrsqrt.f32 %v2345_v51  ;;  %v1537_v62 = vpop.eup %1536  ;;  %v1254_v45 = vpack.c.bf16 %v1060_v25, %v1059_v0  ;;  %v1017_v41 = vmul.f32 %v992_v37, %v903_v35 }
 0x1a7   :  { %v1211_v12 = vadd.f32 -1.0, %v992_v37  ;;  %v820_v11 = vmin.f32 %v1535_v42, 0.996  ;;  %v1539_v21 = vpop.eup %1538  ;;  %v1051_v38 = vsel %vm1025_vm5, %v1212_v49, %v1018_v24  ;;  %v982_v13 = vmul.f32 2.0, %v1537_v62 }
 0x1a8   :  { %v884_v27 = vmul.f32 %v2319_v34, %v2317_v26  ;;  %1552 = vrsqrt.f32 %v2354_v58  ;;  %v1541_v33 = vpop.eup %1540  ;;  %1255 = vst [vmem:[#allocation2] sm:$0xff] %v1254_v45   ;;  %v1068_v7 = vsel %vm1058_vm6, 1.0, %v1051_v38  ;;  %v555_v9 = vmul.f32 %v1539_v21, %v2284_v20 }
 0x1a9   :  { %v1050_v50 = vsel %vm1025_vm5, %v1211_v12, %v1017_v41  ;;  %v2371_v44 = vsel %vm502_vm3, 0.0, %v820_v11  ;;  %v1543_v6 = vpop.eup %1542  ;;  %v1012_v34 = vmul.f32 %v982_v13, %v898_v30  ;;  %v1206_v19 = vadd.f32 -1.0, %v982_v13 }
 0x1aa   :  { %v1067_v26 = vsel %vm1058_vm6, 1.0, %v1050_v50  ;;  %v906_v3 = vmul.f32 %v1747_v59, %v886_v2  ;;  %v980_v39 = vmul.f32 2.0, %v1543_v6  ;;  %v916_v5 = vmul.f32 %v2371_v44, %v2371_v44 }
 0x1ab   :  { %v1274_v40 = vpack.c.bf16 %v1068_v7, %v1067_v26  ;;  %v557_v23 = vsel %vm556_vm7, %v2284_v20, %v555_v9  ;;  %v1045_v35 = vsel %vm1025_vm5, %v1206_v19, %v1012_v34  ;;  %v905_v52 = vmul.f32 %v884_v27, %v1751_v61  ;;  %v2600_v7 = vld [vmem:[#allocation19_spill] sm:$0xff] }
 0x1ac   :  { %v2391_v59 = vsel %vm558_vm8, %v559_v43, %v557_v23  ;;  %v548_v30 = vmul.f32 %v1541_v33, %v2290_v31  ;;  %v1545_v22 = vpop.eup %1544  ;;  %v1062_v14 = vsel %vm1058_vm6, 1.0, %v1045_v35  ;;  %v1011_v55 = vmul.f32 %v980_v39, %v897_v17 }
 0x1ad   :  { %1294 = vst [vmem:[#allocation2 + $0x20] sm:$0xff] %v1274_v40   ;;  %v1205_v29 = vadd.f32 -1.0, %v980_v39  ;;  %v932_v16 = vmul.f32 -1.0, %v916_v5  ;;  %v1547_v46 = vpop.eup %1546  ;;  %v998_v48 = vmul.f32 2.0, %v1545_v22  ;;  %v588_v61 = vmax.f32 %v2391_v59, 1e-15 }
 0x1ae   :  { %v550_v54 = vsel %vm549_vm9, %v2290_v31, %v548_v30  ;;  %vm514_vm11 = vcmp.eq.f32.partialorder %v2345_v51, inf  ;;  %1554 = vrsqrt.f32 %v2382_v36  ;;  %v1549_v43 = vpop.eup %1548  ;;  %v996_v63 = vmul.f32 2.0, %v1547_v46 }
 0x1af   :  { %v1044_v56 = vsel %vm1025_vm5, %v1205_v29, %v1011_v55  ;;  %v948_v17 = vadd.f32 1.0, %v932_v16  ;;  %v2408_v2 = vsel %vm551_vm10, %v552_v18, %v550_v54  ;;  %v1020_v37 = vmul.f32 %v998_v48, %v906_v3  ;;  %v2599_v18 = vld [vmem:[#allocation16_spill] sm:$0xff]  ;;  %v2601_v3 = vld [vmem:[#allocation17_spill] sm:$0xff]  ;;  %v2603_v54 = vld [vmem:[#allocation14_spill] sm:$0xff] }
 0x1b0   :  { %v1551_v25 = vpop.eup %1550  ;;  %v1061_v4 = vsel %vm1058_vm6, 1.0, %v1044_v56  ;;  %v1214_v42 = vadd.f32 -1.0, %v998_v48  ;;  %v819_v0 = vmin.f32 %v1549_v43, 0.996  ;;  %v1019_v49 = vmul.f32 %v996_v63, %v905_v52 }
 0x1b1   :  { %v1259_v24 = vpack.c.bf16 %v1062_v14, %v1061_v4  ;;  %v1213_v62 = vadd.f32 -1.0, %v996_v63  ;;  %v964_v45 = vmax.f32 %v948_v17, 1e-15  ;;  %v618_v21 = vmul.f32 %v2599_v18, %v588_v61  ;;  %v2457_v63 = vpop.xlane.xlu0 %459 }
 0x1b2   :  { %v1553_v41 = vpop.eup %1552  ;;  %v1053_v12 = vsel %vm1025_vm5, %v1214_v42, %v1020_v37  ;;  %v851_v11 = vsel %vm495_vm4, 0.0, %v819_v0  ;;  %vm516_vm12 = vcmp.eq.f32.partialorder %v2345_v51, 0.0  ;;  %v517_v27 = vand.u32 2147483648, %v2345_v51 }
 0x1b3   :  { %1291 = vst [vmem:[#allocation2 + $0x8] sm:$0xff] %v1259_v24   ;;  %v1070_v38 = vsel %vm1058_vm6, 1.0, %v1053_v12  ;;  %v1052_v13 = vsel %vm1025_vm5, %v1213_v62, %v1019_v49  ;;  %1556 = vrcp.f32 %v964_v45  ;;  %v915_v33 = vmul.f32 %v851_v11, %v851_v11  ;;  %v2604_v24 = vld [vmem:[#allocation18_spill] sm:$0xff] }
 0x1b4   :  { %v1069_v47 = vsel %vm1058_vm6, 1.0, %v1052_v13  ;;  %v796_v50 = vmul.f32 %v2600_v7, %v618_v21  ;;  %v587_v9 = vmax.f32 %v2408_v2, 1e-15  ;;  %v513_v26 = vmul.f32 %v1551_v25, %v2345_v51 }
 0x1b5   :  { %v1279_v6 = vpack.c.bf16 %v1070_v38, %v1069_v47  ;;  %v506_v34 = vmul.f32 %v1553_v41, %v2354_v58  ;;  %vm507_vm13 = vcmp.eq.f32.partialorder %v2354_v58, inf  ;;  %v931_v19 = vmul.f32 -1.0, %v915_v33  ;;  %v2605_v41 = vld [vmem:[#allocation5_spill] sm:$0xff] }
 0x1b6   :  { %1558 = vtanh.f32 %v796_v50  ;;  %v616_v40 = vmul.f32 %v2601_v3, %v587_v9  ;;  %v510_v39 = vand.u32 2147483648, %v2354_v58  ;;  %v515_v5 = vsel %vm514_vm11, %v2345_v51, %v513_v26  ;;  %v2608_v50 = vld [vmem:[#allocation20_spill] sm:$0xff]  ;;  %v2609_v26 = vld [vmem:[#allocation21_spill] sm:$0xff] }
 0x1b7   :  { %1295 = vst [vmem:[#allocation2 + $0x28] sm:$0xff] %v1279_v6   ;;  %1560 = vrcp.f32 %v579_v57  ;;  %v508_v23 = vsel %vm507_vm13, %v2354_v58, %v506_v34  ;;  %vm509_vm14 = vcmp.eq.f32.partialorder %v2354_v58, 0.0  ;;  %v947_v52 = vadd.f32 1.0, %v931_v19  ;;  %v2610_v19 = vld [vmem:[#allocation6_spill] sm:$0xff] }
 0x1b8   :  { %v1555_v35 = vpop.eup %1554  ;;  %v795_v30 = vmul.f32 %v2268_v15, %v616_v40  ;;  %v518_v22 = vsel %vm516_vm12, %v517_v27, %v515_v5  ;;  %v511_v14 = vsel %vm509_vm14, %v510_v39, %v508_v23  ;;  %v766_v55 = vsub.f32 %v2280_v53, %v2287_v8  ;;  %v2602_v15 = vld [vmem:[#allocation13_spill] sm:$0xff]  ;;  %v2606_v27 = vld [vmem:[#allocation15_spill] sm:$0xff] }
 0x1b9   :  { %v582_v10 = vmax.f32 %v518_v22, 1e-15  ;;  %v581_v57 = vmax.f32 %v511_v14, 1e-15  ;;  %v569_v29 = vmul.f32 %v1555_v35, %v2382_v36  ;;  %v963_v16 = vmax.f32 %v947_v52, 1e-15 }
 0x1ba   :  { %1562 = vtanh.f32 %v795_v30  ;;  %vm570_vm15 = vcmp.eq.f32.partialorder %v2382_v36, inf  ;;  %v573_v46 = vand.u32 2147483648, %v2382_v36  ;;  %vm572_vm0 = vcmp.eq.f32.partialorder %v2382_v36, 0.0 }
 0x1bb   :  { %v606_v48 = vmul.f32 %v2602_v15, %v582_v10  ;;  %v604_v43 = vmul.f32 %v2603_v54, %v581_v57  ;;  %v571_v56 = vsel %vm570_vm15, %v2382_v36, %v569_v29  ;;  %1564 = vrcp.f32 %v963_v16 }
 0x1bc   :  { %v2461_v53 = vsel %vm572_vm0, %v573_v46, %v571_v56  ;;  %v874_v17 = vmul.f32 %v2337_v32, %v2371_v44  ;;  %1566 = vrsqrt.f32 %v2457_v63  ;;  %v782_v0 = vmul.f32 0.5, %v766_v55 }
 0x1bd   :  { %v1557_v8 = vpop.eup %1556  ;;  %v790_v25 = vmul.f32 %v2252_v1, %v606_v48  ;;  %v789_v4 = vmul.f32 %v2261_v28, %v604_v43  ;;  %v590_v37 = vmax.f32 %v2461_v53, 1e-15  ;;  %v2607_v47 = vmax.f32 %v2606_v27, 1e-15 }
 0x1be   :  { %v986_v42 = vmul.f32 2.0, %v1557_v8  ;;  %v900_v32 = vmul.f32 %v2605_v41, %v874_v17  ;;  %v700_v6 = vmul.f32 0.6931472, %v2608_v50  ;;  %v748_v20 = vmul.f32 0.6931472, %v2609_v26 }
 0x1bf   :  { %1568 = vtanh.f32 %v790_v25  ;;  %v622_v49 = vmul.f32 %v2604_v24, %v590_v37  ;;  %vm563_vm1 = vcmp.eq.f32.partialorder %v2457_v63, inf  ;;  %vm565_vm3 = vcmp.eq.f32.partialorder %v2457_v63, 0.0 }
 0x1c0   :  { %v1559_v62 = vpop.eup %1558  ;;  %1570 = vtanh.f32 %v789_v4  ;;  %v1014_v12 = vmul.f32 %v986_v42, %v900_v32  ;;  %v1208_v18 = vadd.f32 -1.0, %v986_v42  ;;  %v566_v16 = vand.u32 2147483648, %v2457_v63 }
 0x1c1   :  { %v1561_v45 = vpop.eup %1560  ;;  %v828_v44 = vmin.f32 %v1559_v62, 0.996  ;;  %1572 = vrcp.f32 %v582_v10  ;;  %v798_v1 = vmul.f32 %v782_v0, %v622_v49  ;;  %v2611_v62 = vld [vmem:[#allocation9_spill] sm:$0xff]  ;;  %v765_v32 = vsub.f32 %v700_v6, %v748_v20 }
 0x1c2   :  { %v872_v28 = vmul.f32 %v1561_v45, %v851_v11  ;;  %1574 = vrcp.f32 %v581_v57  ;;  %v1047_v34 = vsel %vm1025_vm5, %v1208_v18, %v1014_v12 }
 0x1c3   :  { %v2475_v21 = vsel %vm558_vm8, 0.0, %v828_v44  ;;  %1576 = vtanh.f32 %v798_v1  ;;  %v1064_v31 = vsel %vm1058_vm6, 1.0, %v1047_v34  ;;  %v2612_v1 = vld [vmem:[#allocation10_spill] sm:$0xff]  ;;  %v2613_v34 = vld [vmem:[#allocation7_spill] sm:$0xff] }
 0x1c4   :  { %v1563_v38 = vpop.eup %1562  ;;  %v924_v13 = vmul.f32 %v2475_v21, %v2475_v21  ;;  %1578 = vrcp.f32 %v2607_v47  ;;  %v899_v3 = vmul.f32 %v872_v28, %v2610_v19 }
 0x1c5   :  { %v827_v33 = vmin.f32 %v1563_v38, 0.996  ;;  %v1565_v7 = vpop.eup %1564  ;;  %1580 = vrcp.f32 %v588_v61 }
 0x1c6   :  { %v940_v11 = vmul.f32 -1.0, %v924_v13  ;;  %v984_v40 = vmul.f32 2.0, %v1565_v7  ;;  %v1567_v5 = vpop.eup %1566  ;;  %1582 = vrcp.f32 %v587_v9 }
 0x1c7   :  { %v859_v39 = vsel %vm551_vm10, 0.0, %v827_v33  ;;  %v562_v30 = vmul.f32 %v1567_v5, %v2457_v63 }
 0x1c8   :  { %v956_v23 = vadd.f32 1.0, %v940_v11  ;;  %v923_v59 = vmul.f32 %v859_v39, %v859_v39  ;;  %v1013_v35 = vmul.f32 %v984_v40, %v899_v3  ;;  %v1207_v52 = vadd.f32 -1.0, %v984_v40 }
 0x1c9   :  { %v1569_v61 = vpop.eup %1568  ;;  %v564_v29 = vsel %vm563_vm1, %v2457_v63, %v562_v30  ;;  %v781_v11 = vmul.f32 0.5, %v765_v32  ;;  %v2615_v32 = vld [vmem:[#allocation11_spill] sm:$0xff] }
 0x1ca   :  { %v1571_v22 = vpop.eup %1570  ;;  %v972_v14 = vmax.f32 %v956_v23, 1e-15  ;;  %v939_v10 = vmul.f32 -1.0, %v923_v59  ;;  %v822_v57 = vmin.f32 %v1569_v61, 0.996  ;;  %v1046_v2 = vsel %vm1025_vm5, %v1207_v52, %v1013_v35  ;;  %v2614_v61 = vld [vmem:[#allocation8_spill] sm:$0xff] }
 0x1cb   :  { %v1573_v55 = vpop.eup %1572  ;;  %v821_v9 = vmin.f32 %v1571_v22, 0.996  ;;  %v1063_v15 = vsel %vm1058_vm6, 1.0, %v1046_v2  ;;  %v567_v51 = vsel %vm565_vm3, %v566_v16, %v564_v29 }
 0x1cc   :  { %v1575_v46 = vpop.eup %1574  ;;  %1584 = vrcp.f32 %v972_v14  ;;  %v955_v48 = vadd.f32 1.0, %v939_v10  ;;  %v854_v54 = vsel %vm516_vm12, 0.0, %v822_v57  ;;  %v1264_v56 = vpack.c.bf16 %v1064_v31, %v1063_v15 }
 0x1cd   :  { %v1577_v43 = vpop.eup %1576  ;;  %v878_v8 = vmul.f32 %v1573_v55, %v854_v54  ;;  %v918_v17 = vmul.f32 %v854_v54, %v854_v54  ;;  %v853_v25 = vsel %vm509_vm14, 0.0, %v821_v9  ;;  %v589_v38 = vmax.f32 %v567_v51, 1e-15 }
 0x1ce   :  { %v971_v4 = vmax.f32 %v955_v48, 1e-15  ;;  %v876_v42 = vmul.f32 %v1575_v46, %v853_v25  ;;  %v917_v0 = vmul.f32 %v853_v25, %v853_v25  ;;  %v830_v24 = vmin.f32 %v1577_v43, 0.996  ;;  %v1579_v49 = vpop.eup %1578  ;;  %1292 = vst [vmem:[#allocation2 + $0x10] sm:$0xff] %v1264_v56  }
 0x1cf   :  { %v902_v45 = vmul.f32 %v2611_v62, %v878_v8  ;;  %v934_v41 = vmul.f32 -1.0, %v918_v17  ;;  %v1581_v44 = vpop.eup %1580  ;;  %v620_v50 = vmul.f32 %v1579_v49, %v589_v38 }
 0x1d0   :  { %1586 = vrcp.f32 %v971_v4  ;;  %v901_v28 = vmul.f32 %v876_v42, %v2612_v1  ;;  %v933_v12 = vmul.f32 -1.0, %v917_v0  ;;  %v862_v58 = vsel %vm572_vm0, 0.0, %v830_v24  ;;  %v1583_v13 = vpop.eup %1582 }
 0x1d1   :  { %v950_v18 = vadd.f32 1.0, %v934_v41  ;;  %v890_v27 = vmul.f32 %v1581_v44, %v2475_v21  ;;  %v926_v7 = vmul.f32 %v862_v58, %v862_v58  ;;  %v797_v26 = vmul.f32 %v781_v11, %v620_v50 }
 0x1d2   :  { %v949_v47 = vadd.f32 1.0, %v933_v12  ;;  %v888_v36 = vmul.f32 %v1583_v13, %v859_v39 }
 0x1d3   :  { %v966_v33 = vmax.f32 %v950_v18, 1e-15  ;;  %v908_v19 = vmul.f32 %v2613_v34, %v890_v27  ;;  %v942_v40 = vmul.f32 -1.0, %v926_v7  ;;  %v2616_v27 = vld [vmem:[#allocation12_spill] sm:$0xff] }
 0x1d4   :  { %v965_v6 = vmax.f32 %v949_v47, 1e-15  ;;  %v907_v35 = vmul.f32 %v888_v36, %v2614_v61 }
 0x1d5   :  { %1588 = vrcp.f32 %v966_v33  ;;  %v958_v30 = vadd.f32 1.0, %v942_v40 }
 0x1d6   :  { %v1585_v20 = vpop.eup %1584  ;;  %1590 = vrcp.f32 %v965_v6 }
 0x1d7   :  { %v1002_v3 = vmul.f32 2.0, %v1585_v20  ;;  %1592 = vtanh.f32 %v797_v26  ;;  %v974_v57 = vmax.f32 %v958_v30, 1e-15 }
 0x1d8   :  { %1594 = vrcp.f32 %v590_v37 }
 0x1d9   :  { %v1022_v5 = vmul.f32 %v1002_v3, %v908_v19  ;;  %v1216_v23 = vadd.f32 -1.0, %v1002_v3  ;;  %1596 = vrcp.f32 %v974_v57 }
 0x1da   :  { %v1587_v59 = vpop.eup %1586  ;;  %1598 = vrcp.f32 %v589_v38 }
 0x1db   :  { %v1055_v21 = vsel %vm1025_vm5, %v1216_v23, %v1022_v5  ;;  %v1000_v52 = vmul.f32 2.0, %v1587_v59 }
 0x1dc   :  { %v1072_v14 = vsel %vm1058_vm6, 1.0, %v1055_v21 }
 0x1dd   :  { %v1021_v22 = vmul.f32 %v1000_v52, %v907_v35  ;;  %v1215_v31 = vadd.f32 -1.0, %v1000_v52 }
 0x1df   :  { %v1589_v10 = vpop.eup %1588  ;;  %v1054_v39 = vsel %vm1025_vm5, %v1215_v31, %v1021_v22 }
 0x1e0   :  { %v1591_v55 = vpop.eup %1590  ;;  %v1071_v2 = vsel %vm1058_vm6, 1.0, %v1054_v39  ;;  %v990_v9 = vmul.f32 2.0, %v1589_v10 }
 0x1e1   :  { %v1593_v29 = vpop.eup %1592  ;;  %v1284_v16 = vpack.c.bf16 %v1072_v14, %v1071_v2  ;;  %v988_v46 = vmul.f32 2.0, %v1591_v55 }
 0x1e2   :  { %v1016_v15 = vmul.f32 %v990_v9, %v902_v45  ;;  %v1210_v48 = vadd.f32 -1.0, %v990_v9  ;;  %v829_v54 = vmin.f32 %v1593_v29, 0.996  ;;  %v1595_v62 = vpop.eup %1594 }
 0x1e3   :  { %1296 = vst [vmem:[#allocation2 + $0x30] sm:$0xff] %v1284_v16   ;;  %v1015_v43 = vmul.f32 %v988_v46, %v901_v28  ;;  %v1209_v56 = vadd.f32 -1.0, %v988_v46  ;;  %v1597_v45 = vpop.eup %1596  ;;  %v894_v63 = vmul.f32 %v1595_v62, %v862_v58 }
 0x1e4   :  { %v1049_v8 = vsel %vm1025_vm5, %v1210_v48, %v1016_v15  ;;  %v861_v17 = vsel %vm565_vm3, 0.0, %v829_v54  ;;  %v1006_v41 = vmul.f32 2.0, %v1597_v45  ;;  %v1599_v44 = vpop.eup %1598 }
 0x1e5   :  { %v1066_v25 = vsel %vm1058_vm6, 1.0, %v1049_v8  ;;  %v1048_v4 = vsel %vm1025_vm5, %v1209_v56, %v1015_v43  ;;  %v925_v42 = vmul.f32 %v861_v17, %v861_v17  ;;  %v910_v51 = vmul.f32 %v2615_v32, %v894_v63 }
 0x1e6   :  { %v1065_v53 = vsel %vm1058_vm6, 1.0, %v1048_v4  ;;  %v1218_v28 = vadd.f32 -1.0, %v1006_v41  ;;  %v892_v12 = vmul.f32 %v1599_v44, %v861_v17 }
 0x1e7   :  { %v1269_v37 = vpack.c.bf16 %v1066_v25, %v1065_v53  ;;  %v941_v0 = vmul.f32 -1.0, %v925_v42  ;;  %v1024_v1 = vmul.f32 %v1006_v41, %v910_v51 }
 0x1e8   :  { %v909_v47 = vmul.f32 %v892_v12, %v2616_v27 }
 0x1e9   :  { %1293 = vst [vmem:[#allocation2 + $0x18] sm:$0xff] %v1269_v37   ;;  %v957_v24 = vadd.f32 1.0, %v941_v0  ;;  %v1057_v13 = vsel %vm1025_vm5, %v1218_v28, %v1024_v1 }
 0x1ea   :  { %v1074_v11 = vsel %vm1058_vm6, 1.0, %v1057_v13 }
 0x1eb   :  { %v973_v49 = vmax.f32 %v957_v24, 1e-15 }
 0x1ed   :  { %1600 = vrcp.f32 %v973_v49 }
 0x1f7   :  { %v1601_v18 = vpop.eup %1600 }
 0x1f8   :  { %v1004_v38 = vmul.f32 2.0, %v1601_v18 }
 0x1fa   :  { %v1023_v33 = vmul.f32 %v1004_v38, %v909_v47  ;;  %v1217_v7 = vadd.f32 -1.0, %v1004_v38 }
 0x1fc   :  { %v1056_v58 = vsel %vm1025_vm5, %v1217_v7, %v1023_v33 }
 0x1fd   :  { %v1073_v50 = vsel %vm1058_vm6, 1.0, %v1056_v58 }
 0x1fe   :  { %v1289_v6 = vpack.c.bf16 %v1074_v11, %v1073_v50 }
 0x200   :  { %1297 = vst [vmem:[#allocation2 + $0x38] sm:$0xff] %v1289_v6  }
 0x201   :  { %1613 = shalt.err (!%p1610_p4)
}
 0x202   :  { %s1614_s18 = scalar_lea.hbm %s2560_s2, 1024 }
 0x203   :  { %p1615_p5 = scmp.ne.s32.totalorder %s2560_s2, %s1614_s18  ;;  %p1618_p6 = scmp.lt.u32.totalorder %s1614_s18, %s2560_s2 }
 0x205   :  { %p1620_p7 = pnand %p1618_p6, %p1615_p5 }
 0x207   :  { %1623 = shalt.err (!%p1620_p7)
}
 0x208   :  { %s1627_s22 = smov 64   ;;  %s1628_s23 = smov 4  }
 0x209   :  { %1166 = dma.vmem_to_hbm [thread:$0]  %s1161_s14, 1024, %s2560_s2, [#allocation3], %s1627_s22, %s1627_s22, %s1628_s23  }
 0x20a   :  { %1624 = dma.done.wait [#allocation3], 1024  }
 0x20b   :  { %1625 = vsyncadd [#allocation3], 4294966272 }
 0x20c   :  { %1170 = vsyncpa [#allocation3], 1 }

</bundles_post_ra>
